<compile_context>
chip_gen: v5e
topology: v5e:2x2
jax: 0.10.0
libtpu: 0.0.40
codegen_flags: <defaults>
</compile_context>

<pallas_src>
import math
import functools

import jax
import jax.numpy as jnp
from jax.experimental import pallas as pl
from jax.experimental.pallas import tpu as pltpu

F32 = jnp.float32
BF16 = jnp.bfloat16


# ----------------------------- fused kernel -------------------------------- #

def _fused_forward_kernel(x_ref, pe_ref, emb_w_ref, emb_b_ref,
                          wqkv_ref, bqkv_ref, wo_ref, bo_ref,
                          w1_ref, b1_ref, w2_ref, b2_ref,
                          g1_ref, be1_ref, g2_ref, be2_ref,
                          out_w_ref, out_b_ref, o_ref,
                          *, num_heads, num_layers, eps, qk_scale):
    Bb, S, In = x_ref.shape                      # Bb == 1 (one batch / grid step)
    D = emb_w_ref.shape[1]
    H = num_heads
    Dh = D // H

    # ---- embedding (sqrt(D) pre-folded into weights) + batch-indexed PE ----
    x2d = x_ref[...].reshape(Bb * S, In).astype(BF16)
    h = jnp.dot(x2d, emb_w_ref[...], preferred_element_type=jnp.float32)
    h = h + emb_b_ref[...] + pe_ref[...].reshape(1, D)          # (Bb*S, D) f32

    # ---- encoder layers (post-norm, ReLU FFN; dropout = identity) ----
    for l in range(num_layers):
        # fused QKV projection (bf16 MXU operands, f32 accumulation)
        qkv = jnp.dot(h.astype(BF16), wqkv_ref[l],
                      preferred_element_type=jnp.float32) + bqkv_ref[l]
        qkv3 = qkv.reshape(Bb, S, 3 * D)

        # split heads and fold them into the einsum batch axis: (H*Bb, S, Dh)
        q_parts, k_parts, v_parts = [], [], []
        for hd in range(H):
            q_parts.append(qkv3[:, :, hd * Dh:(hd + 1) * Dh])
            k_parts.append(qkv3[:, :, D + hd * Dh:D + (hd + 1) * Dh])
            v_parts.append(qkv3[:, :, 2 * D + hd * Dh:2 * D + (hd + 1) * Dh])
        q_all = (jnp.concatenate(q_parts, axis=0) * qk_scale).astype(BF16)
        k_all = jnp.concatenate(k_parts, axis=0).astype(BF16)
        v_all = jnp.concatenate(v_parts, axis=0).astype(BF16)

        # one score einsum, one softmax, one PV einsum for all heads
        s = jnp.einsum('nqd,nkd->nqk', q_all, k_all,
                       preferred_element_type=jnp.float32)       # (H*Bb, S, S)
        s = s - jnp.max(s, axis=-1, keepdims=True)
        p = jnp.exp(s)
        p = p * pl.reciprocal(jnp.sum(p, axis=-1, keepdims=True), approx=True)
        ctx = jnp.einsum('nqk,nkd->nqd', p.astype(BF16), v_all,
                         preferred_element_type=jnp.float32)     # (H*Bb, S, Dh)

        # merge heads back into the feature axis, concat-heads out-projection
        ctx2d = jnp.concatenate(
            [ctx[hd * Bb:(hd + 1) * Bb] for hd in range(H)], axis=-1
        ).reshape(Bb * S, D)
        attn = jnp.dot(ctx2d.astype(BF16), wo_ref[l],
                       preferred_element_type=jnp.float32) + bo_ref[l]

        # residual + LayerNorm 1 (f32)
        x1 = h + attn
        mu1 = jnp.mean(x1, axis=-1, keepdims=True)
        var1 = jnp.mean((x1 - mu1) ** 2, axis=-1, keepdims=True)
        x1 = (x1 - mu1) * jax.lax.rsqrt(var1 + eps) * g1_ref[l] + be1_ref[l]

        # feed-forward (ReLU), bf16 at MXU
        ff = jnp.dot(x1.astype(BF16), w1_ref[l],
                     preferred_element_type=jnp.float32) + b1_ref[l]
        ff = jnp.maximum(ff, 0.0)
        y2 = jnp.dot(ff.astype(BF16), w2_ref[l],
                     preferred_element_type=jnp.float32) + b2_ref[l]

        # residual + LayerNorm 2 (f32)
        x2 = x1 + y2
        mu2 = jnp.mean(x2, axis=-1, keepdims=True)
        var2 = jnp.mean((x2 - mu2) ** 2, axis=-1, keepdims=True)
        h = (x2 - mu2) * jax.lax.rsqrt(var2 + eps) * g2_ref[l] + be2_ref[l]

    # ---- mean-pool over sequence + output projection ----
    m = jnp.mean(h.reshape(Bb, S, D), axis=1)                    # (Bb, D)
    out = jnp.dot(m.astype(BF16), out_w_ref[...],
                  preferred_element_type=jnp.float32) + out_b_ref[...]
    o_ref[...] = out.reshape(Bb, 1, 3)


# ------------------------------- wrapper ----------------------------------- #

def _resident_spec(a):
    """Full-array block, constant index_map: stays resident in VMEM."""
    zeros = (0,) * a.ndim
    return pl.BlockSpec(tuple(a.shape), lambda b: zeros)


def km3former_forward(x, params, *, num_heads):
    B, S, In = x.shape
    D = params['emb_w'].shape[1]
    L, _, FF = params['w1'].shape
    Dh = D // num_heads
    H = num_heads

    # `x + pe[:x.size(0)]` on a batch_first tensor: pe row b added to every
    # sequence position of batch element b.  Pass only (B, 1, D); the
    # broadcast over S happens inside the kernel (free sublane broadcast).
    pe = params['pe_table'][:B].reshape(B, 1, D)

    args = (x, pe, params['emb_w'], params['emb_b'],
            params['wqkv'], params['bqkv'], params['wo'], params['bo'],
            params['w1'], params['b1'], params['w2'], params['b2'],
            params['g1'], params['be1'], params['g2'], params['be2'],
            params['out_w'], params['out_b'])

    # Advisory cost estimate for the XLA scheduler.
    flops = 2 * B * S * In * D + 2 * B * D * 3
    flops += L * (2 * B * S * D * (3 * D)            # fused QKV
                  + 2 * 2 * B * H * S * S * Dh       # scores + PV
                  + 2 * B * S * D * D                # out-proj
                  + 2 * 2 * B * S * D * FF)          # FFN
    transcendentals = L * (B * H * S * S + 3 * B * S)
    bytes_accessed = int(sum(int(a.size) * a.dtype.itemsize for a in args)
                         + B * 3 * 4)
    cost = pl.CostEstimate(flops=int(flops),
                           transcendentals=int(transcendentals),
                           bytes_accessed=bytes_accessed)

    # Explicit scoped-VMEM budget: resident weights/inputs + activation slabs,
    # with generous headroom (defaults are 16/32 MiB and bite as shapes grow).
    resident_bytes = sum(int(a.size) * a.dtype.itemsize for a in args)
    act_bytes = 4 * S * (8 * D + FF + H * S)         # rough per-batch f32 slabs
    vmem_limit = int(min(96 * 2 ** 20,
                         max(16 * 2 ** 20, 8 * (resident_bytes + act_bytes))))

    kernel = functools.partial(_fused_forward_kernel,
                               num_heads=H, num_layers=L,
                               eps=1e-5, qk_scale=1.0 / math.sqrt(Dh))

    in_specs = [
        pl.BlockSpec((1, S, In), lambda b: (b, 0, 0)),   # x      : one batch/step
        pl.BlockSpec((1, 1, D), lambda b: (b, 0, 0)),    # pe row : one batch/step
    ] + [_resident_spec(a) for a in args[2:]]            # weights: resident

    out = pl.pallas_call(
        kernel,
        out_shape=jax.ShapeDtypeStruct((B, 1, 3), F32),
        grid=(B,),
        in_specs=in_specs,
        out_specs=pl.BlockSpec((1, 1, 3), lambda b: (b, 0, 0)),
        compiler_params=pltpu.CompilerParams(
            dimension_semantics=("parallel",),           # v7x: 2nd TC over batch
            vmem_limit_bytes=vmem_limit),
        cost_estimate=cost,
    )(*args)
    return out.reshape(B, 3)


# --------------------------- parameter creation ---------------------------- #

def init_params(key, input_dim, model_dim, num_heads, num_layers, dim_ff,
                max_len=64):
    keys = jax.random.split(key, 2 + num_layers)

    def lin(k, fi, fo):
        kw, kb = jax.random.split(k)
        w = jax.random.normal(kw, (fi, fo), F32) / math.sqrt(fi)
        b = jax.random.normal(kb, (fo,), F32) * 0.01
        return w, b

    emb_w, emb_b = lin(keys[0], input_dim, model_dim)
    # Fold the forward-pass `* sqrt(model_dim)` into the embedding once at
    # init time (do the same once when importing a PyTorch checkpoint).
    emb_scale = math.sqrt(model_dim)
    emb_w, emb_b = emb_w * emb_scale, emb_b * emb_scale
    out_w, out_b = lin(keys[1], model_dim, 3)

    # sinusoidal PE table (max_len, model_dim), identical to PositionalEncoding
    position = jnp.arange(max_len, dtype=F32)[:, None]
    div_term = jnp.exp(jnp.arange(0, model_dim, 2, dtype=F32) *
                       (-math.log(10000.0) / model_dim))
    pe = jnp.zeros((max_len, model_dim), F32)
    pe = pe.at[:, 0::2].set(jnp.sin(position * div_term))
    pe = pe.at[:, 1::2].set(jnp.cos(position * div_term))

    wqkv, bqkv, wo, bo, w1, b1, w2, b2 = [], [], [], [], [], [], [], []
    for i in range(num_layers):
        lk = jax.random.split(keys[2 + i], 6)
        wq_, bq_ = lin(lk[0], model_dim, model_dim)
        wk_, bk_ = lin(lk[1], model_dim, model_dim)
        wv_, bv_ = lin(lk[2], model_dim, model_dim)
        wo_, bo_ = lin(lk[3], model_dim, model_dim)
        w1_, b1_ = lin(lk[4], model_dim, dim_ff)
        w2_, b2_ = lin(lk[5], dim_ff, model_dim)
        wqkv.append(jnp.concatenate([wq_, wk_, wv_], axis=1))
        bqkv.append(jnp.concatenate([bq_, bk_, bv_])[None, :])
        wo.append(wo_); bo.append(bo_[None, :])
        w1.append(w1_); b1.append(b1_[None, :])
        w2.append(w2_); b2.append(b2_[None, :])

    L = num_layers
    # Matmul weights stored in bf16 (MXU fast path, half the DMA / VMEM bytes);
    # biases / LayerNorm params / PE stay f32 (elementwise path stays f32).
    return dict(
        emb_w=emb_w.astype(BF16), emb_b=emb_b[None, :], pe_table=pe,
        wqkv=jnp.stack(wqkv).astype(BF16), bqkv=jnp.stack(bqkv),
        wo=jnp.stack(wo).astype(BF16), bo=jnp.stack(bo),
        w1=jnp.stack(w1).astype(BF16), b1=jnp.stack(b1),
        w2=jnp.stack(w2).astype(BF16), b2=jnp.stack(b2),
        g1=jnp.ones((L, 1, model_dim), F32),
        be1=jnp.zeros((L, 1, model_dim), F32),
        g2=jnp.ones((L, 1, model_dim), F32),
        be2=jnp.zeros((L, 1, model_dim), F32),
        out_w=out_w.astype(BF16), out_b=out_b[None, :])


# --------------------------- pure-JAX reference ----------------------------- #

def _ln(x, g, b, eps=1e-5):
    mu = jnp.mean(x, axis=-1, keepdims=True)
    var = jnp.mean((x - mu) ** 2, axis=-1, keepdims=True)
    return (x - mu) * jax.lax.rsqrt(var + eps) * g + b


def ref_forward(x, params, *, num_heads):
    """f32 reference (weights upcast from their stored dtype)."""
    B, S, _ = x.shape
    D = params['emb_w'].shape[1]
    Dh = D // num_heads
    L = params['wqkv'].shape[0]
    f32 = lambda a: a.astype(F32)

    h = jnp.einsum('bsi,id->bsd', x, f32(params['emb_w'])) + params['emb_b']
    h = h + params['pe_table'][:B][:, None, :]
    for l in range(L):
        wqkv_l, bqkv_l = f32(params['wqkv'][l]), params['bqkv'][l][0]
        q = jnp.einsum('bsd,de->bse', h, wqkv_l[:, :D]) + bqkv_l[:D]
        k = jnp.einsum('bsd,de->bse', h, wqkv_l[:, D:2 * D]) + bqkv_l[D:2 * D]
        v = jnp.einsum('bsd,de->bse', h, wqkv_l[:, 2 * D:]) + bqkv_l[2 * D:]
        q = q.reshape(B, S, num_heads, Dh).transpose(0, 2, 1, 3)
        k = k.reshape(B, S, num_heads, Dh).transpose(0, 2, 1, 3)
        v = v.reshape(B, S, num_heads, Dh).transpose(0, 2, 1, 3)
        s = jnp.einsum('bhqe,bhke->bhqk', q, k) / math.sqrt(Dh)
        p = jax.nn.softmax(s, axis=-1)
        o = jnp.einsum('bhqk,bhke->bhqe', p, v)
        o = o.transpose(0, 2, 1, 3).reshape(B, S, D)
        y = jnp.einsum('bsd,de->bse', o, f32(params['wo'][l])) + params['bo'][l]
        x1 = _ln(h + y, params['g1'][l], params['be1'][l])
        ff = jnp.maximum(jnp.einsum('bsd,df->bsf', x1, f32(params['w1'][l])) +
                         params['b1'][l], 0.0)
        y2 = jnp.einsum('bsf,fd->bsd', ff, f32(params['w2'][l])) + params['b2'][l]
        h = _ln(x1 + y2, params['g2'][l], params['be2'][l])
    m = jnp.mean(h, axis=1)
    return m @ f32(params['out_w']) + params['out_b']


# ----------------------------------- main ----------------------------------- #

if __name__ == "__main__":
    # small shapes: batch=2, seq=8, input_dim=16, model_dim=32, heads=4, ff=64, 2 layers
    B, S, IN_DIM, D, H, FF, L = 2, 8, 16, 32, 4, 64, 2

    key = jax.random.PRNGKey(0)
    kx, kp = jax.random.split(key)
    x = jax.random.normal(kx, (B, S, IN_DIM), F32)
    params = init_params(kp, IN_DIM, D, H, L, FF)

    out = jax.block_until_ready(km3former_forward(x, params, num_heads=H))
    ref = jax.block_until_ready(ref_forward(x, params, num_heads=H))

    assert out.shape == (B, 3), out.shape
    # Tolerance covers bf16-at-MXU activation rounding across 2 layers and the
    # approx (EUP) softmax reciprocal; real bugs show up as O(0.1..1) errors.
    assert bool(jnp.allclose(out, ref, atol=5e-2, rtol=5e-2)), (out, ref)
    print("KERNEL_OK")
</pallas_src>

<mosaic_0001>
module attributes {stable_mosaic.version = 11 : i64} {
  func.func @_fused_forward_kernel(%arg0: i32, %arg1: memref<1x8x16xf32, #tpu.memory_space<vmem>>, %arg2: memref<1x1x32xf32, #tpu.memory_space<vmem>>, %arg3: memref<16x32xbf16, #tpu.memory_space<vmem>>, %arg4: memref<1x32xf32, #tpu.memory_space<vmem>>, %arg5: memref<2x32x96xbf16, #tpu.memory_space<vmem>>, %arg6: memref<2x1x96xf32, #tpu.memory_space<vmem>>, %arg7: memref<2x32x32xbf16, #tpu.memory_space<vmem>>, %arg8: memref<2x1x32xf32, #tpu.memory_space<vmem>>, %arg9: memref<2x32x64xbf16, #tpu.memory_space<vmem>>, %arg10: memref<2x1x64xf32, #tpu.memory_space<vmem>>, %arg11: memref<2x64x32xbf16, #tpu.memory_space<vmem>>, %arg12: memref<2x1x32xf32, #tpu.memory_space<vmem>>, %arg13: memref<2x1x32xf32, #tpu.memory_space<vmem>>, %arg14: memref<2x1x32xf32, #tpu.memory_space<vmem>>, %arg15: memref<2x1x32xf32, #tpu.memory_space<vmem>>, %arg16: memref<2x1x32xf32, #tpu.memory_space<vmem>>, %arg17: memref<32x3xbf16, #tpu.memory_space<vmem>>, %arg18: memref<1x3xf32, #tpu.memory_space<vmem>>, %arg19: memref<1x1x3xf32, #tpu.memory_space<vmem>>) attributes {dimension_semantics = [#tpu.dimension_semantics<parallel>], iteration_bounds = array<i64: 2>, scalar_prefetch = 0 : i64, scratch_operands = 0 : i64, tpu.core_type = #tpu.core_type<tc>, window_params = [{transform_indices = @transform_0, window_bounds = array<i64: 1, 8, 16>}, {transform_indices = @transform_1, window_bounds = array<i64: 1, 1, 32>}, {pipeline_mode = #tpu.pipeline_mode<synchronous>, transform_indices = @transform_2, window_bounds = array<i64: 16, 32>}, {pipeline_mode = #tpu.pipeline_mode<synchronous>, transform_indices = @transform_3, window_bounds = array<i64: 1, 32>}, {pipeline_mode = #tpu.pipeline_mode<synchronous>, transform_indices = @transform_4, window_bounds = array<i64: 2, 32, 96>}, {pipeline_mode = #tpu.pipeline_mode<synchronous>, transform_indices = @transform_5, window_bounds = array<i64: 2, 1, 96>}, {pipeline_mode = #tpu.pipeline_mode<synchronous>, transform_indices = @transform_6, window_bounds = array<i64: 2, 32, 32>}, {pipeline_mode = #tpu.pipeline_mode<synchronous>, transform_indices = @transform_7, window_bounds = array<i64: 2, 1, 32>}, {pipeline_mode = #tpu.pipeline_mode<synchronous>, transform_indices = @transform_8, window_bounds = array<i64: 2, 32, 64>}, {pipeline_mode = #tpu.pipeline_mode<synchronous>, transform_indices = @transform_9, window_bounds = array<i64: 2, 1, 64>}, {pipeline_mode = #tpu.pipeline_mode<synchronous>, transform_indices = @transform_10, window_bounds = array<i64: 2, 64, 32>}, {pipeline_mode = #tpu.pipeline_mode<synchronous>, transform_indices = @transform_11, window_bounds = array<i64: 2, 1, 32>}, {pipeline_mode = #tpu.pipeline_mode<synchronous>, transform_indices = @transform_12, window_bounds = array<i64: 2, 1, 32>}, {pipeline_mode = #tpu.pipeline_mode<synchronous>, transform_indices = @transform_13, window_bounds = array<i64: 2, 1, 32>}, {pipeline_mode = #tpu.pipeline_mode<synchronous>, transform_indices = @transform_14, window_bounds = array<i64: 2, 1, 32>}, {pipeline_mode = #tpu.pipeline_mode<synchronous>, transform_indices = @transform_15, window_bounds = array<i64: 2, 1, 32>}, {pipeline_mode = #tpu.pipeline_mode<synchronous>, transform_indices = @transform_16, window_bounds = array<i64: 32, 3>}, {pipeline_mode = #tpu.pipeline_mode<synchronous>, transform_indices = @transform_17, window_bounds = array<i64: 1, 3>}, {transform_indices = @transform_18, window_bounds = array<i64: 1, 1, 3>}]} {
    %c0 = arith.constant 0 : index
    %c0_0 = arith.constant 0 : index
    %c0_1 = arith.constant 0 : index
    %0 = vector.load %arg1[%c0, %c0_0, %c0_1] : memref<1x8x16xf32, #tpu.memory_space<vmem>>, vector<1x8x16xf32>
    %1 = vector.shape_cast %0 : vector<1x8x16xf32> to vector<8x16xf32>
    %2 = arith.truncf %1 : vector<8x16xf32> to vector<8x16xbf16>
    %c0_2 = arith.constant 0 : index
    %c0_3 = arith.constant 0 : index
    %3 = vector.load %arg3[%c0_2, %c0_3] : memref<16x32xbf16, #tpu.memory_space<vmem>>, vector<16x32xbf16>
    %cst = arith.constant dense<0.000000e+00> : vector<8x32xf32>
    %4 = tpu.matmul %2, %3, %cst {dimension_numbers = #tpu.dot_dimension_numbers<[1], [0], [0], [1], [0, 0, 1, 1], [], []>} : vector<8x16xbf16>, vector<16x32xbf16>, vector<8x32xf32> -> vector<8x32xf32>
    %c0_4 = arith.constant 0 : index
    %c0_5 = arith.constant 0 : index
    %5 = vector.load %arg4[%c0_4, %c0_5] : memref<1x32xf32, #tpu.memory_space<vmem>>, vector<1x32xf32>
    %6 = vector.broadcast %5 : vector<1x32xf32> to vector<8x32xf32>
    %7 = arith.addf %4, %6 : vector<8x32xf32>
    %c0_6 = arith.constant 0 : index
    %c0_7 = arith.constant 0 : index
    %c0_8 = arith.constant 0 : index
    %8 = vector.load %arg2[%c0_6, %c0_7, %c0_8] : memref<1x1x32xf32, #tpu.memory_space<vmem>>, vector<1x1x32xf32>
    %9 = vector.shape_cast %8 : vector<1x1x32xf32> to vector<1x32xf32>
    %10 = vector.broadcast %9 : vector<1x32xf32> to vector<8x32xf32>
    %11 = arith.addf %7, %10 : vector<8x32xf32>
    %12 = arith.truncf %11 : vector<8x32xf32> to vector<8x32xbf16>
    %c0_9 = arith.constant 0 : index
    %c0_10 = arith.constant 0 : index
    %c0_11 = arith.constant 0 : index
    %13 = vector.load %arg5[%c0_9, %c0_10, %c0_11] : memref<2x32x96xbf16, #tpu.memory_space<vmem>>, vector<1x32x96xbf16>
    %14 = vector.shape_cast %13 : vector<1x32x96xbf16> to vector<32x96xbf16>
    %cst_12 = arith.constant dense<0.000000e+00> : vector<8x96xf32>
    %15 = tpu.matmul %12, %14, %cst_12 {dimension_numbers = #tpu.dot_dimension_numbers<[1], [0], [0], [1], [0, 0, 1, 1], [], []>} : vector<8x32xbf16>, vector<32x96xbf16>, vector<8x96xf32> -> vector<8x96xf32>
    %c0_13 = arith.constant 0 : index
    %c0_14 = arith.constant 0 : index
    %c0_15 = arith.constant 0 : index
    %16 = vector.load %arg6[%c0_13, %c0_14, %c0_15] : memref<2x1x96xf32, #tpu.memory_space<vmem>>, vector<1x1x96xf32>
    %17 = vector.shape_cast %16 : vector<1x1x96xf32> to vector<1x96xf32>
    %18 = vector.broadcast %17 : vector<1x96xf32> to vector<8x96xf32>
    %19 = arith.addf %15, %18 : vector<8x96xf32>
    %20 = vector.shape_cast %19 : vector<8x96xf32> to vector<1x8x96xf32>
    %21 = vector.extract_strided_slice %20 {offsets = [0, 0, 0], sizes = [1, 8, 8], strides = [1, 1, 1]} : vector<1x8x96xf32> to vector<1x8x8xf32>
    %22 = vector.extract_strided_slice %20 {offsets = [0, 0, 32], sizes = [1, 8, 8], strides = [1, 1, 1]} : vector<1x8x96xf32> to vector<1x8x8xf32>
    %23 = vector.extract_strided_slice %20 {offsets = [0, 0, 64], sizes = [1, 8, 8], strides = [1, 1, 1]} : vector<1x8x96xf32> to vector<1x8x8xf32>
    %24 = vector.extract_strided_slice %20 {offsets = [0, 0, 8], sizes = [1, 8, 8], strides = [1, 1, 1]} : vector<1x8x96xf32> to vector<1x8x8xf32>
    %25 = vector.extract_strided_slice %20 {offsets = [0, 0, 40], sizes = [1, 8, 8], strides = [1, 1, 1]} : vector<1x8x96xf32> to vector<1x8x8xf32>
    %26 = vector.extract_strided_slice %20 {offsets = [0, 0, 72], sizes = [1, 8, 8], strides = [1, 1, 1]} : vector<1x8x96xf32> to vector<1x8x8xf32>
    %27 = vector.extract_strided_slice %20 {offsets = [0, 0, 16], sizes = [1, 8, 8], strides = [1, 1, 1]} : vector<1x8x96xf32> to vector<1x8x8xf32>
    %28 = vector.extract_strided_slice %20 {offsets = [0, 0, 48], sizes = [1, 8, 8], strides = [1, 1, 1]} : vector<1x8x96xf32> to vector<1x8x8xf32>
    %29 = vector.extract_strided_slice %20 {offsets = [0, 0, 80], sizes = [1, 8, 8], strides = [1, 1, 1]} : vector<1x8x96xf32> to vector<1x8x8xf32>
    %30 = vector.extract_strided_slice %20 {offsets = [0, 0, 24], sizes = [1, 8, 8], strides = [1, 1, 1]} : vector<1x8x96xf32> to vector<1x8x8xf32>
    %31 = vector.extract_strided_slice %20 {offsets = [0, 0, 56], sizes = [1, 8, 8], strides = [1, 1, 1]} : vector<1x8x96xf32> to vector<1x8x8xf32>
    %32 = vector.extract_strided_slice %20 {offsets = [0, 0, 88], sizes = [1, 8, 8], strides = [1, 1, 1]} : vector<1x8x96xf32> to vector<1x8x8xf32>
    %33 = tpu.concatenate %21, %24, %27, %30 in 0 : vector<1x8x8xf32>, vector<1x8x8xf32>, vector<1x8x8xf32>, vector<1x8x8xf32> -> vector<4x8x8xf32>
    %cst_16 = arith.constant 0.353553385 : f32
    %34 = vector.broadcast %cst_16 : f32 to vector<4x8x8xf32>
    %35 = arith.mulf %33, %34 : vector<4x8x8xf32>
    %36 = arith.truncf %35 : vector<4x8x8xf32> to vector<4x8x8xbf16>
    %37 = tpu.concatenate %22, %25, %28, %31 in 0 : vector<1x8x8xf32>, vector<1x8x8xf32>, vector<1x8x8xf32>, vector<1x8x8xf32> -> vector<4x8x8xf32>
    %38 = arith.truncf %37 : vector<4x8x8xf32> to vector<4x8x8xbf16>
    %39 = tpu.concatenate %23, %26, %29, %32 in 0 : vector<1x8x8xf32>, vector<1x8x8xf32>, vector<1x8x8xf32>, vector<1x8x8xf32> -> vector<4x8x8xf32>
    %40 = arith.truncf %39 : vector<4x8x8xf32> to vector<4x8x8xbf16>
    "tpu.trace_start"() <{level = 10 : i32, message = "nqd,nkd->nqk"}> : () -> ()
    %cst_17 = arith.constant dense<0.000000e+00> : vector<4x8x8xf32>
    %41 = tpu.matmul %36, %38, %cst_17 {dimension_numbers = #tpu.dot_dimension_numbers<[2], [2], [1], [1], [0, 0, 0, 1, 1, 1], [0], [0]>} : vector<4x8x8xbf16>, vector<4x8x8xbf16>, vector<4x8x8xf32> -> vector<4x8x8xf32>
    "tpu.trace_stop"() : () -> ()
    %cst_18 = arith.constant dense<0xFF800000> : vector<4x8xf32>
    %42 = vector.multi_reduction <maximumf>, %41, %cst_18 [2] : vector<4x8x8xf32> to vector<4x8xf32>
    %43 = vector.shape_cast %42 : vector<4x8xf32> to vector<4x8x1xf32>
    %44 = vector.broadcast %43 : vector<4x8x1xf32> to vector<4x8x8xf32>
    %45 = arith.subf %41, %44 : vector<4x8x8xf32>
    %46 = math.exp %45 : vector<4x8x8xf32>
    %cst_19 = arith.constant dense<0.000000e+00> : vector<4x8xf32>
    %47 = vector.multi_reduction <add>, %46, %cst_19 [2] : vector<4x8x8xf32> to vector<4x8xf32>
    %48 = vector.shape_cast %47 : vector<4x8xf32> to vector<4x8x1xf32>
    %49 = tpu.reciprocal %48 {approx = true} : vector<4x8x1xf32> -> vector<4x8x1xf32>
    %50 = vector.broadcast %49 : vector<4x8x1xf32> to vector<4x8x8xf32>
    %51 = arith.mulf %46, %50 : vector<4x8x8xf32>
    %52 = arith.truncf %51 : vector<4x8x8xf32> to vector<4x8x8xbf16>
    "tpu.trace_start"() <{level = 10 : i32, message = "nqk,nkd->nqd"}> : () -> ()
    %cst_20 = arith.constant dense<0.000000e+00> : vector<4x8x8xf32>
    %53 = tpu.matmul %52, %40, %cst_20 {dimension_numbers = #tpu.dot_dimension_numbers<[2], [1], [1], [2], [0, 0, 0, 1, 1, 2], [0], [0]>} : vector<4x8x8xbf16>, vector<4x8x8xbf16>, vector<4x8x8xf32> -> vector<4x8x8xf32>
    "tpu.trace_stop"() : () -> ()
    %54 = vector.extract_strided_slice %53 {offsets = [0, 0, 0], sizes = [1, 8, 8], strides = [1, 1, 1]} : vector<4x8x8xf32> to vector<1x8x8xf32>
    %55 = vector.extract_strided_slice %53 {offsets = [1, 0, 0], sizes = [1, 8, 8], strides = [1, 1, 1]} : vector<4x8x8xf32> to vector<1x8x8xf32>
    %56 = vector.extract_strided_slice %53 {offsets = [2, 0, 0], sizes = [1, 8, 8], strides = [1, 1, 1]} : vector<4x8x8xf32> to vector<1x8x8xf32>
    %57 = vector.extract_strided_slice %53 {offsets = [3, 0, 0], sizes = [1, 8, 8], strides = [1, 1, 1]} : vector<4x8x8xf32> to vector<1x8x8xf32>
    %58 = tpu.concatenate %54, %55, %56, %57 in 2 : vector<1x8x8xf32>, vector<1x8x8xf32>, vector<1x8x8xf32>, vector<1x8x8xf32> -> vector<1x8x32xf32>
    %59 = vector.shape_cast %58 : vector<1x8x32xf32> to vector<8x32xf32>
    %60 = arith.truncf %59 : vector<8x32xf32> to vector<8x32xbf16>
    %c0_21 = arith.constant 0 : index
    %c0_22 = arith.constant 0 : index
    %c0_23 = arith.constant 0 : index
    %61 = vector.load %arg7[%c0_21, %c0_22, %c0_23] : memref<2x32x32xbf16, #tpu.memory_space<vmem>>, vector<1x32x32xbf16>
    %62 = vector.shape_cast %61 : vector<1x32x32xbf16> to vector<32x32xbf16>
    %cst_24 = arith.constant dense<0.000000e+00> : vector<8x32xf32>
    %63 = tpu.matmul %60, %62, %cst_24 {dimension_numbers = #tpu.dot_dimension_numbers<[1], [0], [0], [1], [0, 0, 1, 1], [], []>} : vector<8x32xbf16>, vector<32x32xbf16>, vector<8x32xf32> -> vector<8x32xf32>
    %c0_25 = arith.constant 0 : index
    %c0_26 = arith.constant 0 : index
    %c0_27 = arith.constant 0 : index
    %64 = vector.load %arg8[%c0_25, %c0_26, %c0_27] : memref<2x1x32xf32, #tpu.memory_space<vmem>>, vector<1x1x32xf32>
    %65 = vector.shape_cast %64 : vector<1x1x32xf32> to vector<1x32xf32>
    %66 = vector.broadcast %65 : vector<1x32xf32> to vector<8x32xf32>
    %67 = arith.addf %63, %66 : vector<8x32xf32>
    %68 = arith.addf %11, %67 : vector<8x32xf32>
    %cst_28 = arith.constant dense<0.000000e+00> : vector<8xf32>
    %69 = vector.multi_reduction <add>, %68, %cst_28 [1] : vector<8x32xf32> to vector<8xf32>
    %70 = vector.shape_cast %69 : vector<8xf32> to vector<8x1xf32>
    %cst_29 = arith.constant 3.200000e+01 : f32
    %71 = vector.broadcast %cst_29 : f32 to vector<8x1xf32>
    %72 = arith.divf %70, %71 : vector<8x1xf32>
    %73 = vector.broadcast %72 : vector<8x1xf32> to vector<8x32xf32>
    %74 = arith.subf %68, %73 : vector<8x32xf32>
    %75 = arith.mulf %74, %74 : vector<8x32xf32>
    %cst_30 = arith.constant dense<0.000000e+00> : vector<8xf32>
    %76 = vector.multi_reduction <add>, %75, %cst_30 [1] : vector<8x32xf32> to vector<8xf32>
    %77 = vector.shape_cast %76 : vector<8xf32> to vector<8x1xf32>
    %cst_31 = arith.constant 3.200000e+01 : f32
    %78 = vector.broadcast %cst_31 : f32 to vector<8x1xf32>
    %79 = arith.divf %77, %78 : vector<8x1xf32>
    %80 = vector.broadcast %72 : vector<8x1xf32> to vector<8x32xf32>
    %81 = arith.subf %68, %80 : vector<8x32xf32>
    %cst_32 = arith.constant 9.99999974E-6 : f32
    %82 = vector.broadcast %cst_32 : f32 to vector<8x1xf32>
    %83 = arith.addf %79, %82 : vector<8x1xf32>
    %84 = math.rsqrt %83 : vector<8x1xf32>
    %85 = vector.broadcast %84 : vector<8x1xf32> to vector<8x32xf32>
    %86 = arith.mulf %81, %85 : vector<8x32xf32>
    %c0_33 = arith.constant 0 : index
    %c0_34 = arith.constant 0 : index
    %c0_35 = arith.constant 0 : index
    %87 = vector.load %arg13[%c0_33, %c0_34, %c0_35] : memref<2x1x32xf32, #tpu.memory_space<vmem>>, vector<1x1x32xf32>
    %88 = vector.shape_cast %87 : vector<1x1x32xf32> to vector<1x32xf32>
    %89 = vector.broadcast %88 : vector<1x32xf32> to vector<8x32xf32>
    %90 = arith.mulf %86, %89 : vector<8x32xf32>
    %c0_36 = arith.constant 0 : index
    %c0_37 = arith.constant 0 : index
    %c0_38 = arith.constant 0 : index
    %91 = vector.load %arg14[%c0_36, %c0_37, %c0_38] : memref<2x1x32xf32, #tpu.memory_space<vmem>>, vector<1x1x32xf32>
    %92 = vector.shape_cast %91 : vector<1x1x32xf32> to vector<1x32xf32>
    %93 = vector.broadcast %92 : vector<1x32xf32> to vector<8x32xf32>
    %94 = arith.addf %90, %93 : vector<8x32xf32>
    %95 = arith.truncf %94 : vector<8x32xf32> to vector<8x32xbf16>
    %c0_39 = arith.constant 0 : index
    %c0_40 = arith.constant 0 : index
    %c0_41 = arith.constant 0 : index
    %96 = vector.load %arg9[%c0_39, %c0_40, %c0_41] : memref<2x32x64xbf16, #tpu.memory_space<vmem>>, vector<1x32x64xbf16>
    %97 = vector.shape_cast %96 : vector<1x32x64xbf16> to vector<32x64xbf16>
    %cst_42 = arith.constant dense<0.000000e+00> : vector<8x64xf32>
    %98 = tpu.matmul %95, %97, %cst_42 {dimension_numbers = #tpu.dot_dimension_numbers<[1], [0], [0], [1], [0, 0, 1, 1], [], []>} : vector<8x32xbf16>, vector<32x64xbf16>, vector<8x64xf32> -> vector<8x64xf32>
    %c0_43 = arith.constant 0 : index
    %c0_44 = arith.constant 0 : index
    %c0_45 = arith.constant 0 : index
    %99 = vector.load %arg10[%c0_43, %c0_44, %c0_45] : memref<2x1x64xf32, #tpu.memory_space<vmem>>, vector<1x1x64xf32>
    %100 = vector.shape_cast %99 : vector<1x1x64xf32> to vector<1x64xf32>
    %101 = vector.broadcast %100 : vector<1x64xf32> to vector<8x64xf32>
    %102 = arith.addf %98, %101 : vector<8x64xf32>
    %cst_46 = arith.constant 0.000000e+00 : f32
    %103 = vector.broadcast %cst_46 : f32 to vector<8x64xf32>
    %104 = arith.maximumf %102, %103 : vector<8x64xf32>
    %105 = arith.truncf %104 : vector<8x64xf32> to vector<8x64xbf16>
    %c0_47 = arith.constant 0 : index
    %c0_48 = arith.constant 0 : index
    %c0_49 = arith.constant 0 : index
    %106 = vector.load %arg11[%c0_47, %c0_48, %c0_49] : memref<2x64x32xbf16, #tpu.memory_space<vmem>>, vector<1x64x32xbf16>
    %107 = vector.shape_cast %106 : vector<1x64x32xbf16> to vector<64x32xbf16>
    %cst_50 = arith.constant dense<0.000000e+00> : vector<8x32xf32>
    %108 = tpu.matmul %105, %107, %cst_50 {dimension_numbers = #tpu.dot_dimension_numbers<[1], [0], [0], [1], [0, 0, 1, 1], [], []>} : vector<8x64xbf16>, vector<64x32xbf16>, vector<8x32xf32> -> vector<8x32xf32>
    %c0_51 = arith.constant 0 : index
    %c0_52 = arith.constant 0 : index
    %c0_53 = arith.constant 0 : index
    %109 = vector.load %arg12[%c0_51, %c0_52, %c0_53] : memref<2x1x32xf32, #tpu.memory_space<vmem>>, vector<1x1x32xf32>
    %110 = vector.shape_cast %109 : vector<1x1x32xf32> to vector<1x32xf32>
    %111 = vector.broadcast %110 : vector<1x32xf32> to vector<8x32xf32>
    %112 = arith.addf %108, %111 : vector<8x32xf32>
    %113 = arith.addf %94, %112 : vector<8x32xf32>
    %cst_54 = arith.constant dense<0.000000e+00> : vector<8xf32>
    %114 = vector.multi_reduction <add>, %113, %cst_54 [1] : vector<8x32xf32> to vector<8xf32>
    %115 = vector.shape_cast %114 : vector<8xf32> to vector<8x1xf32>
    %cst_55 = arith.constant 3.200000e+01 : f32
    %116 = vector.broadcast %cst_55 : f32 to vector<8x1xf32>
    %117 = arith.divf %115, %116 : vector<8x1xf32>
    %118 = vector.broadcast %117 : vector<8x1xf32> to vector<8x32xf32>
    %119 = arith.subf %113, %118 : vector<8x32xf32>
    %120 = arith.mulf %119, %119 : vector<8x32xf32>
    %cst_56 = arith.constant dense<0.000000e+00> : vector<8xf32>
    %121 = vector.multi_reduction <add>, %120, %cst_56 [1] : vector<8x32xf32> to vector<8xf32>
    %122 = vector.shape_cast %121 : vector<8xf32> to vector<8x1xf32>
    %cst_57 = arith.constant 3.200000e+01 : f32
    %123 = vector.broadcast %cst_57 : f32 to vector<8x1xf32>
    %124 = arith.divf %122, %123 : vector<8x1xf32>
    %125 = vector.broadcast %117 : vector<8x1xf32> to vector<8x32xf32>
    %126 = arith.subf %113, %125 : vector<8x32xf32>
    %cst_58 = arith.constant 9.99999974E-6 : f32
    %127 = vector.broadcast %cst_58 : f32 to vector<8x1xf32>
    %128 = arith.addf %124, %127 : vector<8x1xf32>
    %129 = math.rsqrt %128 : vector<8x1xf32>
    %130 = vector.broadcast %129 : vector<8x1xf32> to vector<8x32xf32>
    %131 = arith.mulf %126, %130 : vector<8x32xf32>
    %c0_59 = arith.constant 0 : index
    %c0_60 = arith.constant 0 : index
    %c0_61 = arith.constant 0 : index
    %132 = vector.load %arg15[%c0_59, %c0_60, %c0_61] : memref<2x1x32xf32, #tpu.memory_space<vmem>>, vector<1x1x32xf32>
    %133 = vector.shape_cast %132 : vector<1x1x32xf32> to vector<1x32xf32>
    %134 = vector.broadcast %133 : vector<1x32xf32> to vector<8x32xf32>
    %135 = arith.mulf %131, %134 : vector<8x32xf32>
    %c0_62 = arith.constant 0 : index
    %c0_63 = arith.constant 0 : index
    %c0_64 = arith.constant 0 : index
    %136 = vector.load %arg16[%c0_62, %c0_63, %c0_64] : memref<2x1x32xf32, #tpu.memory_space<vmem>>, vector<1x1x32xf32>
    %137 = vector.shape_cast %136 : vector<1x1x32xf32> to vector<1x32xf32>
    %138 = vector.broadcast %137 : vector<1x32xf32> to vector<8x32xf32>
    %139 = arith.addf %135, %138 : vector<8x32xf32>
    %140 = arith.truncf %139 : vector<8x32xf32> to vector<8x32xbf16>
    %c1 = arith.constant 1 : index
    %c0_65 = arith.constant 0 : index
    %c0_66 = arith.constant 0 : index
    %141 = vector.load %arg5[%c1, %c0_65, %c0_66] : memref<2x32x96xbf16, #tpu.memory_space<vmem>>, vector<1x32x96xbf16>
    %142 = vector.shape_cast %141 : vector<1x32x96xbf16> to vector<32x96xbf16>
    %cst_67 = arith.constant dense<0.000000e+00> : vector<8x96xf32>
    %143 = tpu.matmul %140, %142, %cst_67 {dimension_numbers = #tpu.dot_dimension_numbers<[1], [0], [0], [1], [0, 0, 1, 1], [], []>} : vector<8x32xbf16>, vector<32x96xbf16>, vector<8x96xf32> -> vector<8x96xf32>
    %c1_68 = arith.constant 1 : index
    %c0_69 = arith.constant 0 : index
    %c0_70 = arith.constant 0 : index
    %144 = vector.load %arg6[%c1_68, %c0_69, %c0_70] : memref<2x1x96xf32, #tpu.memory_space<vmem>>, vector<1x1x96xf32>
    %145 = vector.shape_cast %144 : vector<1x1x96xf32> to vector<1x96xf32>
    %146 = vector.broadcast %145 : vector<1x96xf32> to vector<8x96xf32>
    %147 = arith.addf %143, %146 : vector<8x96xf32>
    %148 = vector.shape_cast %147 : vector<8x96xf32> to vector<1x8x96xf32>
    %149 = vector.extract_strided_slice %148 {offsets = [0, 0, 0], sizes = [1, 8, 8], strides = [1, 1, 1]} : vector<1x8x96xf32> to vector<1x8x8xf32>
    %150 = vector.extract_strided_slice %148 {offsets = [0, 0, 32], sizes = [1, 8, 8], strides = [1, 1, 1]} : vector<1x8x96xf32> to vector<1x8x8xf32>
    %151 = vector.extract_strided_slice %148 {offsets = [0, 0, 64], sizes = [1, 8, 8], strides = [1, 1, 1]} : vector<1x8x96xf32> to vector<1x8x8xf32>
    %152 = vector.extract_strided_slice %148 {offsets = [0, 0, 8], sizes = [1, 8, 8], strides = [1, 1, 1]} : vector<1x8x96xf32> to vector<1x8x8xf32>
    %153 = vector.extract_strided_slice %148 {offsets = [0, 0, 40], sizes = [1, 8, 8], strides = [1, 1, 1]} : vector<1x8x96xf32> to vector<1x8x8xf32>
    %154 = vector.extract_strided_slice %148 {offsets = [0, 0, 72], sizes = [1, 8, 8], strides = [1, 1, 1]} : vector<1x8x96xf32> to vector<1x8x8xf32>
    %155 = vector.extract_strided_slice %148 {offsets = [0, 0, 16], sizes = [1, 8, 8], strides = [1, 1, 1]} : vector<1x8x96xf32> to vector<1x8x8xf32>
    %156 = vector.extract_strided_slice %148 {offsets = [0, 0, 48], sizes = [1, 8, 8], strides = [1, 1, 1]} : vector<1x8x96xf32> to vector<1x8x8xf32>
    %157 = vector.extract_strided_slice %148 {offsets = [0, 0, 80], sizes = [1, 8, 8], strides = [1, 1, 1]} : vector<1x8x96xf32> to vector<1x8x8xf32>
    %158 = vector.extract_strided_slice %148 {offsets = [0, 0, 24], sizes = [1, 8, 8], strides = [1, 1, 1]} : vector<1x8x96xf32> to vector<1x8x8xf32>
    %159 = vector.extract_strided_slice %148 {offsets = [0, 0, 56], sizes = [1, 8, 8], strides = [1, 1, 1]} : vector<1x8x96xf32> to vector<1x8x8xf32>
    %160 = vector.extract_strided_slice %148 {offsets = [0, 0, 88], sizes = [1, 8, 8], strides = [1, 1, 1]} : vector<1x8x96xf32> to vector<1x8x8xf32>
    %161 = tpu.concatenate %149, %152, %155, %158 in 0 : vector<1x8x8xf32>, vector<1x8x8xf32>, vector<1x8x8xf32>, vector<1x8x8xf32> -> vector<4x8x8xf32>
    %cst_71 = arith.constant 0.353553385 : f32
    %162 = vector.broadcast %cst_71 : f32 to vector<4x8x8xf32>
    %163 = arith.mulf %161, %162 : vector<4x8x8xf32>
    %164 = arith.truncf %163 : vector<4x8x8xf32> to vector<4x8x8xbf16>
    %165 = tpu.concatenate %150, %153, %156, %159 in 0 : vector<1x8x8xf32>, vector<1x8x8xf32>, vector<1x8x8xf32>, vector<1x8x8xf32> -> vector<4x8x8xf32>
    %166 = arith.truncf %165 : vector<4x8x8xf32> to vector<4x8x8xbf16>
    %167 = tpu.concatenate %151, %154, %157, %160 in 0 : vector<1x8x8xf32>, vector<1x8x8xf32>, vector<1x8x8xf32>, vector<1x8x8xf32> -> vector<4x8x8xf32>
    %168 = arith.truncf %167 : vector<4x8x8xf32> to vector<4x8x8xbf16>
    "tpu.trace_start"() <{level = 10 : i32, message = "nqd,nkd->nqk"}> : () -> ()
    %cst_72 = arith.constant dense<0.000000e+00> : vector<4x8x8xf32>
    %169 = tpu.matmul %164, %166, %cst_72 {dimension_numbers = #tpu.dot_dimension_numbers<[2], [2], [1], [1], [0, 0, 0, 1, 1, 1], [0], [0]>} : vector<4x8x8xbf16>, vector<4x8x8xbf16>, vector<4x8x8xf32> -> vector<4x8x8xf32>
    "tpu.trace_stop"() : () -> ()
    %cst_73 = arith.constant dense<0xFF800000> : vector<4x8xf32>
    %170 = vector.multi_reduction <maximumf>, %169, %cst_73 [2] : vector<4x8x8xf32> to vector<4x8xf32>
    %171 = vector.shape_cast %170 : vector<4x8xf32> to vector<4x8x1xf32>
    %172 = vector.broadcast %171 : vector<4x8x1xf32> to vector<4x8x8xf32>
    %173 = arith.subf %169, %172 : vector<4x8x8xf32>
    %174 = math.exp %173 : vector<4x8x8xf32>
    %cst_74 = arith.constant dense<0.000000e+00> : vector<4x8xf32>
    %175 = vector.multi_reduction <add>, %174, %cst_74 [2] : vector<4x8x8xf32> to vector<4x8xf32>
    %176 = vector.shape_cast %175 : vector<4x8xf32> to vector<4x8x1xf32>
    %177 = tpu.reciprocal %176 {approx = true} : vector<4x8x1xf32> -> vector<4x8x1xf32>
    %178 = vector.broadcast %177 : vector<4x8x1xf32> to vector<4x8x8xf32>
    %179 = arith.mulf %174, %178 : vector<4x8x8xf32>
    %180 = arith.truncf %179 : vector<4x8x8xf32> to vector<4x8x8xbf16>
    "tpu.trace_start"() <{level = 10 : i32, message = "nqk,nkd->nqd"}> : () -> ()
    %cst_75 = arith.constant dense<0.000000e+00> : vector<4x8x8xf32>
    %181 = tpu.matmul %180, %168, %cst_75 {dimension_numbers = #tpu.dot_dimension_numbers<[2], [1], [1], [2], [0, 0, 0, 1, 1, 2], [0], [0]>} : vector<4x8x8xbf16>, vector<4x8x8xbf16>, vector<4x8x8xf32> -> vector<4x8x8xf32>
    "tpu.trace_stop"() : () -> ()
    %182 = vector.extract_strided_slice %181 {offsets = [0, 0, 0], sizes = [1, 8, 8], strides = [1, 1, 1]} : vector<4x8x8xf32> to vector<1x8x8xf32>
    %183 = vector.extract_strided_slice %181 {offsets = [1, 0, 0], sizes = [1, 8, 8], strides = [1, 1, 1]} : vector<4x8x8xf32> to vector<1x8x8xf32>
    %184 = vector.extract_strided_slice %181 {offsets = [2, 0, 0], sizes = [1, 8, 8], strides = [1, 1, 1]} : vector<4x8x8xf32> to vector<1x8x8xf32>
    %185 = vector.extract_strided_slice %181 {offsets = [3, 0, 0], sizes = [1, 8, 8], strides = [1, 1, 1]} : vector<4x8x8xf32> to vector<1x8x8xf32>
    %186 = tpu.concatenate %182, %183, %184, %185 in 2 : vector<1x8x8xf32>, vector<1x8x8xf32>, vector<1x8x8xf32>, vector<1x8x8xf32> -> vector<1x8x32xf32>
    %187 = vector.shape_cast %186 : vector<1x8x32xf32> to vector<8x32xf32>
    %188 = arith.truncf %187 : vector<8x32xf32> to vector<8x32xbf16>
    %c1_76 = arith.constant 1 : index
    %c0_77 = arith.constant 0 : index
    %c0_78 = arith.constant 0 : index
    %189 = vector.load %arg7[%c1_76, %c0_77, %c0_78] : memref<2x32x32xbf16, #tpu.memory_space<vmem>>, vector<1x32x32xbf16>
    %190 = vector.shape_cast %189 : vector<1x32x32xbf16> to vector<32x32xbf16>
    %cst_79 = arith.constant dense<0.000000e+00> : vector<8x32xf32>
    %191 = tpu.matmul %188, %190, %cst_79 {dimension_numbers = #tpu.dot_dimension_numbers<[1], [0], [0], [1], [0, 0, 1, 1], [], []>} : vector<8x32xbf16>, vector<32x32xbf16>, vector<8x32xf32> -> vector<8x32xf32>
    %c1_80 = arith.constant 1 : index
    %c0_81 = arith.constant 0 : index
    %c0_82 = arith.constant 0 : index
    %192 = vector.load %arg8[%c1_80, %c0_81, %c0_82] : memref<2x1x32xf32, #tpu.memory_space<vmem>>, vector<1x1x32xf32>
    %193 = vector.shape_cast %192 : vector<1x1x32xf32> to vector<1x32xf32>
    %194 = vector.broadcast %193 : vector<1x32xf32> to vector<8x32xf32>
    %195 = arith.addf %191, %194 : vector<8x32xf32>
    %196 = arith.addf %139, %195 : vector<8x32xf32>
    %cst_83 = arith.constant dense<0.000000e+00> : vector<8xf32>
    %197 = vector.multi_reduction <add>, %196, %cst_83 [1] : vector<8x32xf32> to vector<8xf32>
    %198 = vector.shape_cast %197 : vector<8xf32> to vector<8x1xf32>
    %cst_84 = arith.constant 3.200000e+01 : f32
    %199 = vector.broadcast %cst_84 : f32 to vector<8x1xf32>
    %200 = arith.divf %198, %199 : vector<8x1xf32>
    %201 = vector.broadcast %200 : vector<8x1xf32> to vector<8x32xf32>
    %202 = arith.subf %196, %201 : vector<8x32xf32>
    %203 = arith.mulf %202, %202 : vector<8x32xf32>
    %cst_85 = arith.constant dense<0.000000e+00> : vector<8xf32>
    %204 = vector.multi_reduction <add>, %203, %cst_85 [1] : vector<8x32xf32> to vector<8xf32>
    %205 = vector.shape_cast %204 : vector<8xf32> to vector<8x1xf32>
    %cst_86 = arith.constant 3.200000e+01 : f32
    %206 = vector.broadcast %cst_86 : f32 to vector<8x1xf32>
    %207 = arith.divf %205, %206 : vector<8x1xf32>
    %208 = vector.broadcast %200 : vector<8x1xf32> to vector<8x32xf32>
    %209 = arith.subf %196, %208 : vector<8x32xf32>
    %cst_87 = arith.constant 9.99999974E-6 : f32
    %210 = vector.broadcast %cst_87 : f32 to vector<8x1xf32>
    %211 = arith.addf %207, %210 : vector<8x1xf32>
    %212 = math.rsqrt %211 : vector<8x1xf32>
    %213 = vector.broadcast %212 : vector<8x1xf32> to vector<8x32xf32>
    %214 = arith.mulf %209, %213 : vector<8x32xf32>
    %c1_88 = arith.constant 1 : index
    %c0_89 = arith.constant 0 : index
    %c0_90 = arith.constant 0 : index
    %215 = vector.load %arg13[%c1_88, %c0_89, %c0_90] : memref<2x1x32xf32, #tpu.memory_space<vmem>>, vector<1x1x32xf32>
    %216 = vector.shape_cast %215 : vector<1x1x32xf32> to vector<1x32xf32>
    %217 = vector.broadcast %216 : vector<1x32xf32> to vector<8x32xf32>
    %218 = arith.mulf %214, %217 : vector<8x32xf32>
    %c1_91 = arith.constant 1 : index
    %c0_92 = arith.constant 0 : index
    %c0_93 = arith.constant 0 : index
    %219 = vector.load %arg14[%c1_91, %c0_92, %c0_93] : memref<2x1x32xf32, #tpu.memory_space<vmem>>, vector<1x1x32xf32>
    %220 = vector.shape_cast %219 : vector<1x1x32xf32> to vector<1x32xf32>
    %221 = vector.broadcast %220 : vector<1x32xf32> to vector<8x32xf32>
    %222 = arith.addf %218, %221 : vector<8x32xf32>
    %223 = arith.truncf %222 : vector<8x32xf32> to vector<8x32xbf16>
    %c1_94 = arith.constant 1 : index
    %c0_95 = arith.constant 0 : index
    %c0_96 = arith.constant 0 : index
    %224 = vector.load %arg9[%c1_94, %c0_95, %c0_96] : memref<2x32x64xbf16, #tpu.memory_space<vmem>>, vector<1x32x64xbf16>
    %225 = vector.shape_cast %224 : vector<1x32x64xbf16> to vector<32x64xbf16>
    %cst_97 = arith.constant dense<0.000000e+00> : vector<8x64xf32>
    %226 = tpu.matmul %223, %225, %cst_97 {dimension_numbers = #tpu.dot_dimension_numbers<[1], [0], [0], [1], [0, 0, 1, 1], [], []>} : vector<8x32xbf16>, vector<32x64xbf16>, vector<8x64xf32> -> vector<8x64xf32>
    %c1_98 = arith.constant 1 : index
    %c0_99 = arith.constant 0 : index
    %c0_100 = arith.constant 0 : index
    %227 = vector.load %arg10[%c1_98, %c0_99, %c0_100] : memref<2x1x64xf32, #tpu.memory_space<vmem>>, vector<1x1x64xf32>
    %228 = vector.shape_cast %227 : vector<1x1x64xf32> to vector<1x64xf32>
    %229 = vector.broadcast %228 : vector<1x64xf32> to vector<8x64xf32>
    %230 = arith.addf %226, %229 : vector<8x64xf32>
    %cst_101 = arith.constant 0.000000e+00 : f32
    %231 = vector.broadcast %cst_101 : f32 to vector<8x64xf32>
    %232 = arith.maximumf %230, %231 : vector<8x64xf32>
    %233 = arith.truncf %232 : vector<8x64xf32> to vector<8x64xbf16>
    %c1_102 = arith.constant 1 : index
    %c0_103 = arith.constant 0 : index
    %c0_104 = arith.constant 0 : index
    %234 = vector.load %arg11[%c1_102, %c0_103, %c0_104] : memref<2x64x32xbf16, #tpu.memory_space<vmem>>, vector<1x64x32xbf16>
    %235 = vector.shape_cast %234 : vector<1x64x32xbf16> to vector<64x32xbf16>
    %cst_105 = arith.constant dense<0.000000e+00> : vector<8x32xf32>
    %236 = tpu.matmul %233, %235, %cst_105 {dimension_numbers = #tpu.dot_dimension_numbers<[1], [0], [0], [1], [0, 0, 1, 1], [], []>} : vector<8x64xbf16>, vector<64x32xbf16>, vector<8x32xf32> -> vector<8x32xf32>
    %c1_106 = arith.constant 1 : index
    %c0_107 = arith.constant 0 : index
    %c0_108 = arith.constant 0 : index
    %237 = vector.load %arg12[%c1_106, %c0_107, %c0_108] : memref<2x1x32xf32, #tpu.memory_space<vmem>>, vector<1x1x32xf32>
    %238 = vector.shape_cast %237 : vector<1x1x32xf32> to vector<1x32xf32>
    %239 = vector.broadcast %238 : vector<1x32xf32> to vector<8x32xf32>
    %240 = arith.addf %236, %239 : vector<8x32xf32>
    %241 = arith.addf %222, %240 : vector<8x32xf32>
    %cst_109 = arith.constant dense<0.000000e+00> : vector<8xf32>
    %242 = vector.multi_reduction <add>, %241, %cst_109 [1] : vector<8x32xf32> to vector<8xf32>
    %243 = vector.shape_cast %242 : vector<8xf32> to vector<8x1xf32>
    %cst_110 = arith.constant 3.200000e+01 : f32
    %244 = vector.broadcast %cst_110 : f32 to vector<8x1xf32>
    %245 = arith.divf %243, %244 : vector<8x1xf32>
    %246 = vector.broadcast %245 : vector<8x1xf32> to vector<8x32xf32>
    %247 = arith.subf %241, %246 : vector<8x32xf32>
    %248 = arith.mulf %247, %247 : vector<8x32xf32>
    %cst_111 = arith.constant dense<0.000000e+00> : vector<8xf32>
    %249 = vector.multi_reduction <add>, %248, %cst_111 [1] : vector<8x32xf32> to vector<8xf32>
    %250 = vector.shape_cast %249 : vector<8xf32> to vector<8x1xf32>
    %cst_112 = arith.constant 3.200000e+01 : f32
    %251 = vector.broadcast %cst_112 : f32 to vector<8x1xf32>
    %252 = arith.divf %250, %251 : vector<8x1xf32>
    %253 = vector.broadcast %245 : vector<8x1xf32> to vector<8x32xf32>
    %254 = arith.subf %241, %253 : vector<8x32xf32>
    %cst_113 = arith.constant 9.99999974E-6 : f32
    %255 = vector.broadcast %cst_113 : f32 to vector<8x1xf32>
    %256 = arith.addf %252, %255 : vector<8x1xf32>
    %257 = math.rsqrt %256 : vector<8x1xf32>
    %258 = vector.broadcast %257 : vector<8x1xf32> to vector<8x32xf32>
    %259 = arith.mulf %254, %258 : vector<8x32xf32>
    %c1_114 = arith.constant 1 : index
    %c0_115 = arith.constant 0 : index
    %c0_116 = arith.constant 0 : index
    %260 = vector.load %arg15[%c1_114, %c0_115, %c0_116] : memref<2x1x32xf32, #tpu.memory_space<vmem>>, vector<1x1x32xf32>
    %261 = vector.shape_cast %260 : vector<1x1x32xf32> to vector<1x32xf32>
    %262 = vector.broadcast %261 : vector<1x32xf32> to vector<8x32xf32>
    %263 = arith.mulf %259, %262 : vector<8x32xf32>
    %c1_117 = arith.constant 1 : index
    %c0_118 = arith.constant 0 : index
    %c0_119 = arith.constant 0 : index
    %264 = vector.load %arg16[%c1_117, %c0_118, %c0_119] : memref<2x1x32xf32, #tpu.memory_space<vmem>>, vector<1x1x32xf32>
    %265 = vector.shape_cast %264 : vector<1x1x32xf32> to vector<1x32xf32>
    %266 = vector.broadcast %265 : vector<1x32xf32> to vector<8x32xf32>
    %267 = arith.addf %263, %266 : vector<8x32xf32>
    %268 = vector.shape_cast %267 : vector<8x32xf32> to vector<1x8x32xf32>
    %cst_120 = arith.constant dense<0.000000e+00> : vector<1x32xf32>
    %269 = vector.multi_reduction <add>, %268, %cst_120 [1] : vector<1x8x32xf32> to vector<1x32xf32>
    %cst_121 = arith.constant 8.000000e+00 : f32
    %270 = vector.broadcast %cst_121 : f32 to vector<1x32xf32>
    %271 = arith.divf %269, %270 : vector<1x32xf32>
    %272 = arith.truncf %271 : vector<1x32xf32> to vector<1x32xbf16>
    %c0_122 = arith.constant 0 : index
    %c0_123 = arith.constant 0 : index
    %273 = vector.load %arg17[%c0_122, %c0_123] : memref<32x3xbf16, #tpu.memory_space<vmem>>, vector<32x3xbf16>
    %cst_124 = arith.constant dense<0.000000e+00> : vector<1x3xf32>
    %274 = tpu.matmul %272, %273, %cst_124 {dimension_numbers = #tpu.dot_dimension_numbers<[1], [0], [0], [1], [0, 0, 1, 1], [], []>} : vector<1x32xbf16>, vector<32x3xbf16>, vector<1x3xf32> -> vector<1x3xf32>
    %c0_125 = arith.constant 0 : index
    %c0_126 = arith.constant 0 : index
    %275 = vector.load %arg18[%c0_125, %c0_126] : memref<1x3xf32, #tpu.memory_space<vmem>>, vector<1x3xf32>
    %276 = arith.addf %274, %275 : vector<1x3xf32>
    %277 = vector.shape_cast %276 : vector<1x3xf32> to vector<1x1x3xf32>
    %c0_127 = arith.constant 0 : index
    %c0_128 = arith.constant 0 : index
    %c0_129 = arith.constant 0 : index
    %278 = vector.load %arg19[%c0_127, %c0_128, %c0_129] : memref<1x1x3xf32, #tpu.memory_space<vmem>>, vector<1x1x3xf32>
    tpu.vector_store %arg19[%c0_127, %c0_128, %c0_129], %277 {strides = array<i32>} : memref<1x1x3xf32, #tpu.memory_space<vmem>>, vector<1x1x3xf32>,
    return
  }
  func.func @transform_0(%arg0: i32) -> (i32, i32, i32) {
    %c0_i32 = arith.constant 0 : i32
    %c0_i32_0 = arith.constant 0 : i32
    %c0_i32_1 = arith.constant 0 : i32
    return %arg0, %c0_i32, %c0_i32_0 : i32, i32, i32
  }
  func.func @transform_1(%arg0: i32) -> (i32, i32, i32) {
    %c0_i32 = arith.constant 0 : i32
    %c0_i32_0 = arith.constant 0 : i32
    %c0_i32_1 = arith.constant 0 : i32
    return %arg0, %c0_i32, %c0_i32_0 : i32, i32, i32
  }
  func.func @transform_2(%arg0: i32) -> (i32, i32) {
    %c0_i32 = arith.constant 0 : i32
    %c0_i32_0 = arith.constant 0 : i32
    %c0_i32_1 = arith.constant 0 : i32
    return %c0_i32, %c0_i32_0 : i32, i32
  }
  func.func @transform_3(%arg0: i32) -> (i32, i32) {
    %c0_i32 = arith.constant 0 : i32
    %c0_i32_0 = arith.constant 0 : i32
    %c0_i32_1 = arith.constant 0 : i32
    return %c0_i32, %c0_i32_0 : i32, i32
  }
  func.func @transform_4(%arg0: i32) -> (i32, i32, i32) {
    %c0_i32 = arith.constant 0 : i32
    %c0_i32_0 = arith.constant 0 : i32
    %c0_i32_1 = arith.constant 0 : i32
    %c0_i32_2 = arith.constant 0 : i32
    return %c0_i32, %c0_i32_0, %c0_i32_1 : i32, i32, i32
  }
  func.func @transform_5(%arg0: i32) -> (i32, i32, i32) {
    %c0_i32 = arith.constant 0 : i32
    %c0_i32_0 = arith.constant 0 : i32
    %c0_i32_1 = arith.constant 0 : i32
    %c0_i32_2 = arith.constant 0 : i32
    return %c0_i32, %c0_i32_0, %c0_i32_1 : i32, i32, i32
  }
  func.func @transform_6(%arg0: i32) -> (i32, i32, i32) {
    %c0_i32 = arith.constant 0 : i32
    %c0_i32_0 = arith.constant 0 : i32
    %c0_i32_1 = arith.constant 0 : i32
    %c0_i32_2 = arith.constant 0 : i32
    return %c0_i32, %c0_i32_0, %c0_i32_1 : i32, i32, i32
  }
  func.func @transform_7(%arg0: i32) -> (i32, i32, i32) {
    %c0_i32 = arith.constant 0 : i32
    %c0_i32_0 = arith.constant 0 : i32
    %c0_i32_1 = arith.constant 0 : i32
    %c0_i32_2 = arith.constant 0 : i32
    return %c0_i32, %c0_i32_0, %c0_i32_1 : i32, i32, i32
  }
  func.func @transform_8(%arg0: i32) -> (i32, i32, i32) {
    %c0_i32 = arith.constant 0 : i32
    %c0_i32_0 = arith.constant 0 : i32
    %c0_i32_1 = arith.constant 0 : i32
    %c0_i32_2 = arith.constant 0 : i32
    return %c0_i32, %c0_i32_0, %c0_i32_1 : i32, i32, i32
  }
  func.func @transform_9(%arg0: i32) -> (i32, i32, i32) {
    %c0_i32 = arith.constant 0 : i32
    %c0_i32_0 = arith.constant 0 : i32
    %c0_i32_1 = arith.constant 0 : i32
    %c0_i32_2 = arith.constant 0 : i32
    return %c0_i32, %c0_i32_0, %c0_i32_1 : i32, i32, i32
  }
  func.func @transform_10(%arg0: i32) -> (i32, i32, i32) {
    %c0_i32 = arith.constant 0 : i32
    %c0_i32_0 = arith.constant 0 : i32
    %c0_i32_1 = arith.constant 0 : i32
    %c0_i32_2 = arith.constant 0 : i32
    return %c0_i32, %c0_i32_0, %c0_i32_1 : i32, i32, i32
  }
  func.func @transform_11(%arg0: i32) -> (i32, i32, i32) {
    %c0_i32 = arith.constant 0 : i32
    %c0_i32_0 = arith.constant 0 : i32
    %c0_i32_1 = arith.constant 0 : i32
    %c0_i32_2 = arith.constant 0 : i32
    return %c0_i32, %c0_i32_0, %c0_i32_1 : i32, i32, i32
  }
  func.func @transform_12(%arg0: i32) -> (i32, i32, i32) {
    %c0_i32 = arith.constant 0 : i32
    %c0_i32_0 = arith.constant 0 : i32
    %c0_i32_1 = arith.constant 0 : i32
    %c0_i32_2 = arith.constant 0 : i32
    return %c0_i32, %c0_i32_0, %c0_i32_1 : i32, i32, i32
  }
  func.func @transform_13(%arg0: i32) -> (i32, i32, i32) {
    %c0_i32 = arith.constant 0 : i32
    %c0_i32_0 = arith.constant 0 : i32
    %c0_i32_1 = arith.constant 0 : i32
    %c0_i32_2 = arith.constant 0 : i32
    return %c0_i32, %c0_i32_0, %c0_i32_1 : i32, i32, i32
  }
  func.func @transform_14(%arg0: i32) -> (i32, i32, i32) {
    %c0_i32 = arith.constant 0 : i32
    %c0_i32_0 = arith.constant 0 : i32
    %c0_i32_1 = arith.constant 0 : i32
    %c0_i32_2 = arith.constant 0 : i32
    return %c0_i32, %c0_i32_0, %c0_i32_1 : i32, i32, i32
  }
  func.func @transform_15(%arg0: i32) -> (i32, i32, i32) {
    %c0_i32 = arith.constant 0 : i32
    %c0_i32_0 = arith.constant 0 : i32
    %c0_i32_1 = arith.constant 0 : i32
    %c0_i32_2 = arith.constant 0 : i32
    return %c0_i32, %c0_i32_0, %c0_i32_1 : i32, i32, i32
  }
  func.func @transform_16(%arg0: i32) -> (i32, i32) {
    %c0_i32 = arith.constant 0 : i32
    %c0_i32_0 = arith.constant 0 : i32
    %c0_i32_1 = arith.constant 0 : i32
    return %c0_i32, %c0_i32_0 : i32, i32
  }
  func.func @transform_17(%arg0: i32) -> (i32, i32) {
    %c0_i32 = arith.constant 0 : i32
    %c0_i32_0 = arith.constant 0 : i32
    %c0_i32_1 = arith.constant 0 : i32
    return %c0_i32, %c0_i32_0 : i32, i32
  }
  func.func @transform_18(%arg0: i32) -> (i32, i32, i32) {
    %c0_i32 = arith.constant 0 : i32
    %c0_i32_0 = arith.constant 0 : i32
    %c0_i32_1 = arith.constant 0 : i32
    return %arg0, %c0_i32, %c0_i32_0 : i32, i32, i32
  }
}

</mosaic_0001>

<bundles_post_ra>
// kernel: tpu_custom_call.1
= control target key start
LH: loop header
LB: loop body
LE: loop exit
PB: predicated region body
PF: predicated region fallthrough
CT: control target
= control target key end

     0   :  { %s2901_s0 = inlined_call_operand.vmem [shape: f32[2,8,16], index: 0, kind: input, shape index: {}]   ;;  %s2902_s1 = inlined_call_operand.vmem [shape: f32[2,1,32], index: 1, kind: input, shape index: {}]   ;;  %s2903_s2 = inlined_call_operand.hbm [shape: bf16[16,32], index: 2, kind: input, shape index: {}]   ;;  %s2904_s3 = inlined_call_operand.vmem [shape: f32[1,32], index: 3, kind: input, shape index: {}]   ;;  %s2905_s4 = inlined_call_operand.vmem [shape: bf16[2,32,96], index: 4, kind: input, shape index: {}]   ;;  %s2906_s5 = inlined_call_operand.hbm [shape: f32[2,1,96], index: 5, kind: input, shape index: {}]   ;;  %s2907_s6 = inlined_call_operand.vmem [shape: bf16[2,32,32], index: 6, kind: input, shape index: {}]   ;;  %s2908_s7 = inlined_call_operand.vmem [shape: f32[2,1,32], index: 7, kind: input, shape index: {}]   ;;  %s2909_s8 = inlined_call_operand.vmem [shape: bf16[2,32,64], index: 8, kind: input, shape index: {}]   ;;  %s2910_s9 = inlined_call_operand.vmem [shape: f32[2,1,64], index: 9, kind: input, shape index: {}]   ;;  %s2911_s10 = inlined_call_operand.vmem [shape: bf16[2,64,32], index: 10, kind: input, shape index: {}]   ;;  %s2912_s11 = inlined_call_operand.vmem [shape: f32[2,1,32], index: 11, kind: input, shape index: {}]   ;;  %s2913_s12 = inlined_call_operand.vmem [shape: f32[2,1,32], index: 12, kind: input, shape index: {}]   ;;  %s2914_s13 = inlined_call_operand.hbm [shape: f32[2,1,32], index: 13, kind: input, shape index: {}]   ;;  %s2915_s14 = inlined_call_operand.vmem [shape: f32[2,1,32], index: 14, kind: input, shape index: {}]   ;;  %s2916_s15 = inlined_call_operand.hbm [shape: f32[2,1,32], index: 15, kind: input, shape index: {}]   ;;  %s2917_s16 = inlined_call_operand.vmem [shape: bf16[32,3], index: 16, kind: input, shape index: {}]   ;;  %s2918_s17 = inlined_call_operand.vmem [shape: f32[1,3], index: 17, kind: input, shape index: {}]   ;;  %s2919_s18 = inlined_call_operand.hbm [shape: f32[2,1,3], index: 18, kind: output, shape index: {}]  }
   0x1   :  { %2931 = sst [smem:[#allocation23_spill]] %s2901_s0 }
   0x2   :  { %2932 = sst [smem:[#allocation24_spill]] %s2902_s1 }
   0x3   :  { %2933 = sst [smem:[#allocation25_spill]] %s2903_s2 }
   0x4   :  { %2934 = sst [smem:[#allocation26_spill]] %s2906_s5 }
   0x5   :  { %2935 = sst [smem:[#allocation27_spill]] %s2917_s16 }
   0x6   :  { %2936 = sst [smem:[#allocation28_spill]] %s2918_s17 }
   0x7   :  { %2937 = sst [smem:[#allocation29_spill]] %s2919_s18 }
   0x8   :  { %23 = vsyncpa [#allocation3], 0 }
   0x9   :  { %24 = vsyncpa [#allocation6], 0 }
   0xa   :  { %25 = vsyncpa [#allocation9], 0 }
   0xb   :  { %26 = vsyncpa [#allocation4], 0 }
   0xc   :  { %28 = vsyncpa [#allocation4 + $0x1], 0  ;;  %s2519_s27 = smov 0   ;;  %s2521_s28 = smov 0  }
   0xd   :  { %s2523_s29 = smov 0   ;;  %s2525_s30 = smov 0  }
   0xe LB: > { %2938 = sst [smem:[#allocation15_spill]] %s2392_s27  ;;  %s2540_s0 = sadd.s32 4294967295, %s2404_s30   ;;  %s2404_s30 = sphi %s2525_s30, %s2962_s30   ;;  %s2400_s29 = sphi %s2523_s29, %s2965_s29   ;;  %s2396_s28 = sphi %s2521_s28, %s2964_s28   ;;  %s2392_s27 = sphi %s2519_s27, %s2963_s27  }
   0xf   : > { %2939 = sst [smem:[#allocation16_spill]] %s2396_s28  ;;  %s1873_s19 = sadd.s32 4294967294, %s2404_s30  }
  0x10   : > { %2940 = sst [smem:[#allocation17_spill]] %s2400_s29  ;;  %s2544_s1 = sadd.s32 1, %s2404_s30  }
  0x11   : > { %2941 = sst [smem:[#allocation18_spill]] %s2404_s30  ;;  %s429_s20 = sadd.s32 1, %s2400_s29 }
  0x12   : > { %2942 = sst [smem:[#allocation19_spill]] %s2544_s1  ;;  %s426_s21 = ssub.s32 %s2404_s30, %s2544_s1 }
  0x13   : > { %p439_p0 = scmp.ne.s32.totalorder %s2400_s29, %s2396_s28  ;;  %p427_p1 = scmp.eq.s32.totalorder %s426_s21, 0 }
  0x14   : > { %p440_p2 = scmp.eq.s32.totalorder %s2540_s0, 1  ;;  %p445_p3 = scmp.ne.s32.totalorder %s2396_s28, %s2392_s27 }
  0x15   : > { %p446_p4 = scmp.eq.s32.totalorder %s1873_s19, 1  ;;  %p1874_p7 = scmp.ge.s32.totalorder %s2404_s30, 1 }
  0x16   : > { %s2555_s22 = scalar_select %p427_p1, %s2400_s29, %s429_s20  }
  0x17   : > { %p2557_p5 = por %p440_p2, %p439_p0  ;;  %p2561_p6 = por %p446_p4, %p445_p3 }
  0x18   : > { %2943 = sst [smem:[#allocation20_spill]] %s2555_s22  ;;  %p453_p8 = scmp.lt.s32.totalorder %s2404_s30, 3 }
  0x19   : > { %s2944_s2 = scalar_select %p2557_p5, 1, 0 }
  0x1a   : > { %s2946_s23 = scalar_select %p2561_p6, 1, 0 }
  0x1b   : > { %2945 = sst [smem:[#allocation21_spill]] %s2944_s2  ;;  %p2089_p9 = scmp.eq.s32.totalorder %s2540_s0, 0 }
  0x1c   : > { %2947 = sst [smem:[#allocation22_spill]] %s2946_s23  ;;  %p2568_p10 = pnand %p1874_p7, %p453_p8 }
  0x1d   : > { %s2949_s5 = sld [smem:[#allocation26_spill]]  ;;  %s2406_s20 = smov [#allocation5]  }
  0x1e   : > { %p2072_p11 = pneg %p2568_p10  ;;  %s486_s21 = sshll.u32 %s2406_s20, 4  ;;  %s487_s21 = int_to_ptr.vmem [resolvable:$true] %s486_s21 }
  0x1f   : > { %s2951_s23 = sld [smem:[#allocation25_spill]]  ;;  %s2407_s25 = smov 16  }
  0x20   : > { %p2579_p12 = pnand %p2089_p9, %p2072_p11  ;;  %s2408_s26 = smov 1  }
  0x21   : > { %s2410_s30 = smov 64   ;;  %s2411_s2 = smov 4  }
  0x22   : > { %s519_s29 = sshll.u32 %s2914_s13, 4  ;;  %s2412_s1 = smov [#allocation7]   ;;  %s520_s29 = int_to_ptr.hbm [resolvable:$true] %s519_s29 }
  0x23   : > { %s484_s19 = sshll.u32 %s2949_s5, 4  ;;  %s2409_s5 = smov [#allocation2]   ;;  %s485_s19 = int_to_ptr.hbm [resolvable:$true] %s484_s19 }
  0x24   : > { %2078 = dma.hbm_to_vmem [thread:$0]  (!%p2579_p12), %s485_s19, 32, %s487_s21, [#allocation6], %s2407_s25, %s2407_s25, %s2408_s26  }
  0x25   : > { %s464_s27 = sshll.u32 %s2951_s23, 4  ;;  %s466_s20 = sshll.u32 %s2409_s5, 4  ;;  %s465_s27 = int_to_ptr.hbm [resolvable:$true] %s464_s27  ;;  %s467_s20 = int_to_ptr.vmem [resolvable:$true] %s466_s20 }
  0x26   : > { %2075 = dma.hbm_to_vmem [thread:$0]  (!%p2579_p12), %s465_s27, 128, %s467_s20, [#allocation3], %s2410_s30, %s2410_s30, %s2411_s2  }
  0x27   : > { %s521_s23 = sshll.u32 %s2412_s1, 4  ;;  %s536_s19 = sshll.u32 %s2916_s15, 4  ;;  %s522_s23 = int_to_ptr.vmem [resolvable:$true] %s521_s23  ;;  %s537_s19 = int_to_ptr.hbm [resolvable:$true] %s536_s19 }
  0x28   : > { %2081 = dma.hbm_to_vmem [thread:$0]  (!%p2579_p12), %s520_s29, 32, %s522_s23, [#allocation6], %s2407_s25, %s2407_s25, %s2408_s26  }
  0x29   : > { %s2413_s5 = smov [#allocation8]   ;;  %573 = sbr.rel (%p2568_p10) target bundleno = 4261 (0x10a5), region = 92 }
  0x2a   : > { %s538_s21 = sshll.u32 %s2413_s5, 4  ;;  %s539_s21 = int_to_ptr.vmem [resolvable:$true] %s538_s21 }
  0x2b   : > { %2084 = dma.hbm_to_vmem [thread:$0]  (!%p2579_p12), %s537_s19, 32, %s539_s21, [#allocation9], %s2407_s25, %s2407_s25, %s2408_s26  }
  0x2e   : > { %2375 = dma.done.wait (%p2089_p9), [#allocation3], 128  }
  0x2f   : > { %2377 = vsyncadd (%p2089_p9), [#allocation3], 4294967168 }
  0x30   : > { %2379 = dma.done.wait (%p2089_p9), [#allocation6], 64  }
  0x31   : > { %2381 = vsyncadd (%p2089_p9), [#allocation6], 4294967232 }
  0x32   : > { %2383 = dma.done.wait (%p2089_p9), [#allocation9], 32  }
  0x33   : > { %2385 = vsyncadd (%p2089_p9), [#allocation9], 4294967264  ;;  %p644_p13 = scmp.lt.s32.totalorder %s2540_s0, 1  ;;  %s2952_s28 = sld [smem:[#allocation23_spill]]  ;;  %v2031_v0 = vld [vmem:[#allocation2] sm:$0xff]  ;;  %vm666_vm0 = vcmask 130048  }
  0x34   : > { %s2953_s24 = sld [smem:[#allocation24_spill]]  ;;  %677 = vmatpush.bf16.msra.mxu0 %v2031_v0  ;;  %v2033_v3 = vld [vmem:[%s2905_s4 + $0x8] sm:$0xff]  ;;  %v2032_v4 = vld [vmem:[%s2905_s4] sm:$0xff]  ;;  %vm709_vm1 = vcmask 261120   ;;  %s2414_s5 = smov 104   ;;  %vm753_vm2 = vcmask 64512  }
  0x35   : > { %s645_s16 = scalar_select %p644_p13, %s2540_s0, 1  ;;  %719 = vmatpush.bf16.msra.mxu1 %v2033_v3  ;;  %v2148_v5 = vld [vmem:[%s2904_s3] ss:$0 sm:$0xff]  ;;  %v2150_v12 = vld [vmem:[#allocation5] ss:$0 sm:$0xff]  ;;  %vm898_vm3 = vcmask 1043456  }
  0x36   : > { %s2415_s21 = smov 120   ;;  %s2418_s18 = smov 64   ;;  %vm992_vm4 = vcmask 195584   ;;  %vm1146_vm9 = vcmask 523264  }
  0x37   : > { %s1885_s17 = sshll.u32 %s645_s16, 3  ;;  %s2419_s27 = smov 16  }
  0x38   : > { %s2954_s22 = sld [smem:[#allocation27_spill]] }
  0x39   : > { %s647_s30 = scalar_lea.vmem %s2952_s28, %s1885_s17  ;;  %720 = vmatpush.bf16.msra.mxu1 %v2032_v4  ;;  %s2417_s17 = smov 96  }
  0x3a   : > { %v652_v1 = vld [vmem:[%s647_s30] sm:$0xff]  ;;  %s650_s25 = scalar_lea.vmem %s2953_s24, %s645_s16  ;;  %s2416_s16 = smov 112  }
  0x3b   : > { %v653_v2 = vpack.c.bf16 %v652_v1, %v652_v1  ;;  %v2149_v6 = vld [vmem:[%s650_s25] ss:$0 sm:$0xff]  ;;  %s2420_s28 = smov 8   ;;  %s2421_s30 = smov 24  }
  0x3c   : > { %s2955_s20 = sld [smem:[#allocation16_spill]] }
  0x3d   : > { %1890 = vmatmul.msk.bf16.vlgmr.msra.gmra.mxu0 %vm666_vm0, %v653_v2  ;;  %s2956_s19 = sld [smem:[#allocation29_spill]] }
  0x42   : > { %s642_s29 = sand.u32 1, %s2955_s20  }
  0x43   : > { %s1756_s2 = scalar_lea.sflag [#allocation4], %s642_s29  ;;  %s2350_s20 = scalar_lea.hbm %s2956_s19, 2 }
  0xba   : > { %v679_v7 = vpop.f32.mrf.mxu0 }
  0xbb   : > { %v680_v8 = vadd.f32 %v2148_v5, %v679_v7 }
  0xbd   : > { %v2632_v9 = vadd.f32 %v2149_v6, %v680_v8 }
  0xbf   : > { %v688_v10 = vpack.c.bf16 %v2632_v9, %v2632_v9 }
  0xc1   : > { %1899 = vmatmul.msk.bf16.vlgmr.msra.gmra.mxu1 %vm709_vm1, %v688_v10 }
  0xc2   : > { %v681_v11 = vpop.f32.mrf.mxu0 }
 0x13e   : > { %v722_v13 = vpop.f32.mrf.mxu1 }
 0x13f   : > { %v723_v14 = vadd.f32 %v2150_v12, %v722_v13 }
 0x141   : > { %733 = vrot.lane.b32.xlu1 %v723_v14, %s2414_s5  ;;  %727 = vrot.lane.b32.xlu0 %v723_v14, %s2415_s21  ;;  %v744_v16 = vpack.c.bf16 %v723_v14, %v723_v14  ;;  %v736_v32 = vmul.f32 0.35355338, %v723_v14 }
 0x143   : > { %v749_v17 = vunpack.c.l.b16 %v744_v16  ;;  %v740_v34 = vpack.c.bf16 %v736_v32, %v736_v32 }
 0x145   : > { %v2640_v18 = vpack.c.b16 %v749_v17, %v749_v17 }
 0x146   : > { %v724_v15 = vpop.f32.mrf.mxu1 }
 0x149   : > { %730 = vrot.lane.b32.xlu0 %v723_v14, %s2416_s16 }
 0x151   : > { %751 = vrot.lane.b32.xlu0 %v2640_v18, %s2417_s17 }
 0x1b3   : > { %v728_v19 = vpop.permute.xlu0 %727  ;;  %v734_v25 = vpop.permute.xlu1 %733 }
 0x1b4   : > { %v745_v20 = vpack.c.bf16 %v728_v19, %v728_v19  ;;  %v747_v27 = vpack.c.bf16 %v734_v25, %v734_v25  ;;  %v739_v41 = vmul.f32 0.35355338, %v734_v25  ;;  %v737_v45 = vmul.f32 0.35355338, %v728_v19 }
 0x1b6   : > { %v774_v21 = vunpack.c.l.b16 %v745_v20  ;;  %v822_v30 = vunpack.c.l.b16 %v747_v27  ;;  %v743_v42 = vpack.c.bf16 %v739_v41, %v739_v41  ;;  %v741_v46 = vpack.c.bf16 %v737_v45, %v737_v45 }
 0x1b8   : > { %v2644_v22 = vpack.c.b16 %v774_v21, %v774_v21  ;;  %v823_v33 = vpack.c.b16 %v822_v30, %v822_v30 }
 0x1ba   : > { %776 = vrot.lane.b32.xlu1 %v2644_v22, %s2417_s17 }
 0x1bb   : > { %v731_v23 = vpop.permute.xlu0 %730 }
 0x1bc   : > { %v746_v24 = vpack.c.bf16 %v731_v23, %v731_v23  ;;  %v738_v37 = vmul.f32 0.35355338, %v731_v23 }
 0x1be   : > { %v798_v26 = vunpack.c.l.b16 %v746_v24  ;;  %v742_v38 = vpack.c.bf16 %v738_v37, %v738_v37 }
 0x1c0   : > { %v2648_v28 = vpack.c.b16 %v798_v26, %v798_v26 }
 0x1c2   : > { %800 = vrot.lane.b32.xlu2 %v2648_v28, %s2417_s17 }
 0x1c3   : > { %v752_v29 = vpop.permute.xlu0 %751 }
 0x1c4   : > { %v758_v31 = vsel %vm753_vm2, %v752_v29, 0 }
 0x1c5   : > { %767 = vmatpush.bf16.xpose.msra.mxu2 %v758_v31 }
 0x1ca   : > { %824 = vrot.lane.b32.xlu2 %v823_v33, %s2417_s17 }
 0x1cc   : > { %1900 = vmatmul.msk.bf16.vlgmr.msra.gmra.mxu2 %vm753_vm2, %v740_v34 }
 0x21c   : > { %v801_v35 = vpop.permute.xlu2 %800 }
 0x21d   : > { %v806_v36 = vsel %vm753_vm2, %v801_v35, 0 }
 0x21e   : > { %815 = vmatpush.bf16.xpose.msrb.mxu0 %v806_v36 }
 0x224   : > { %v825_v39 = vpop.permute.xlu2 %824 }
 0x225   : > { %1902 = vmatmul.msk.bf16.vlgmr.msrb.gmra.mxu0 %vm753_vm2, %v742_v38  ;;  %v830_v40 = vsel %vm753_vm2, %v825_v39, 0 }
 0x226   : > { %839 = vmatpush.bf16.xpose.msrb.mxu1 %v830_v40 }
 0x22c   : > { %v777_v43 = vpop.permute.xlu1 %776 }
 0x22d   : > { %1903 = vmatmul.msk.bf16.vlgmr.msrb.gmra.mxu1 %vm753_vm2, %v743_v42  ;;  %v782_v44 = vsel %vm753_vm2, %v777_v43, 0 }
 0x22e   : > { %791 = vmatpush.bf16.xpose.msra.mxu3 %v782_v44 }
 0x235   : > { %1901 = vmatmul.msk.bf16.vlgmr.msra.gmra.mxu3 %vm753_vm2, %v741_v46 }
 0x24f   : > { %v769_v47 = vpop.f32.mrf.mxu2 }
 0x250   : > { %v845_v54 = vsel %vm753_vm2, %v769_v47, -inf }
 0x257   : > { %v771_v48 = vpop.f32.mrf.mxu2 }
 0x258   : > { %v2035_v48 = vld [vmem:[%s2907_s6 + $0x8] sm:$0xff] }
 0x2a2   : > { %v817_v49 = vpop.f32.mrf.mxu0 }
 0x2a3   : > { %v851_v50 = vsel %vm753_vm2, %v817_v49, -inf }
 0x2a4   : > { %852 = vmax.xlane.f32.xlu2 %v851_v50 }
 0x2aa   : > { %v819_v51 = vpop.f32.mrf.mxu0  ;;  %v841_v52 = vpop.f32.mrf.mxu1 }
 0x2ab   : > { %v854_v53 = vsel %vm753_vm2, %v841_v52, -inf }
 0x2ac   : > { %855 = vmax.xlane.f32.xlu0 %v854_v53  ;;  %846 = vmax.xlane.f32.xlu2 %v845_v54 }
 0x2b2   : > { %v843_v55 = vpop.f32.mrf.mxu1 }
 0x2b8   : > { %v793_v56 = vpop.f32.mrf.mxu3 }
 0x2b9   : > { %v848_v57 = vsel %vm753_vm2, %v793_v56, -inf }
 0x2ba   : > { %849 = vmax.xlane.f32.xlu1 %v848_v57  ;;  %v2151_v57 = vld [vmem:[%s2908_s7] ss:$0 sm:$0xff] }
 0x2c0   : > { %v795_v58 = vpop.f32.mrf.mxu3 }
 0x317   : > { %v853_v59 = vpop.xlane.xlu2 %852 }
 0x318   : > { %v859_v60 = vsub.f32 %v817_v49, %v853_v59  ;;  %v2034_v49 = vld [vmem:[%s2907_s6] sm:$0xff] }
 0x31a   : > { %v865_v61 = vmul.f32 1.442695, %v859_v60 }
 0x31c   : > { %2166 = vpow2.f32 %v865_v61 }
 0x31f   : > { %v856_v62 = vpop.xlane.xlu0 %855  ;;  %v847_v11 = vpop.xlane.xlu2 %846 }
 0x320   : > { %v860_v63 = vsub.f32 %v841_v52, %v856_v62  ;;  %v857_v12 = vsub.f32 %v769_v47, %v847_v11  ;;  %v2037_v11 = vld [vmem:[%s2909_s8 + $0x8] sm:$0xff] }
 0x322   : > { %v2167_v0 = vpop.eup %2166  ;;  %v867_v1 = vmul.f32 1.442695, %v860_v63  ;;  %v861_v13 = vmul.f32 1.442695, %v857_v12  ;;  %v2422_v63 = vmov 32.0   ;;  %v2036_v12 = vld [vmem:[%s2909_s8] sm:$0xff] }
 0x323   : > { %v875_v2 = vsel %vm753_vm2, %v2167_v0, 0.0 }
 0x324   : > { %2168 = vpow2.f32 %v867_v1  ;;  %876 = vadd.xlane.f32.xlu2 %v875_v2 }
 0x32a   : > { %v2169_v3 = vpop.eup %2168 }
 0x32b   : > { %v878_v4 = vsel %vm753_vm2, %v2169_v3, 0.0 }
 0x32c   : > { %879 = vadd.xlane.f32.xlu0 %v878_v4 }
 0x32d   : > { %v850_v5 = vpop.xlane.xlu1 %849 }
 0x32e   : > { %v858_v6 = vsub.f32 %v793_v56, %v850_v5 }
 0x330   : > { %v863_v7 = vmul.f32 1.442695, %v858_v6 }
 0x332   : > { %2170 = vpow2.f32 %v863_v7 }
 0x333   : > { %2172 = vpow2.f32 %v861_v13  ;;  %v2041_v13 = vld [vmem:[%s2911_s10 + $0x18] sm:$0xff] }
 0x338   : > { %v2171_v8 = vpop.eup %2170 }
 0x339   : > { %v872_v10 = vsel %vm753_vm2, %v2171_v8, 0.0  ;;  %v2173_v14 = vpop.eup %2172 }
 0x33a   : > { %873 = vadd.xlane.f32.xlu1 %v872_v10  ;;  %v869_v15 = vsel %vm753_vm2, %v2173_v14, 0.0 }
 0x33c   : > { %936 = vrot.lane.b32.xlu2 %v2648_v28, %s2418_s18 }
 0x340   : > { %957 = vrot.lane.b32.xlu0 %v823_v33, %s2418_s18 }
 0x348   : > { %893 = vrot.lane.b32.xlu0 %v2640_v18, %s2418_s18 }
 0x353   : > { %915 = vrot.lane.b32.xlu1 %v2644_v22, %s2418_s18 }
 0x37d   : > { %870 = vadd.xlane.f32.xlu1 %v869_v15 }
 0x397   : > { %v877_v16 = vpop.xlane.xlu2 %876 }
 0x398   : > { %2174 = vrcp.f32 %v877_v16  ;;  %v2040_v16 = vld [vmem:[%s2911_s10 + $0x10] sm:$0xff] }
 0x39e   : > { %v2175_v17 = vpop.eup %2174 }
 0x39f   : > { %v887_v19 = vmul.f32 %v2175_v17, %v2167_v0  ;;  %v937_v20 = vpop.permute.xlu2 %936  ;;  %v880_v22 = vpop.xlane.xlu0 %879 }
 0x3a0   : > { %v942_v21 = vsel %vm898_vm3, %v937_v20, 0  ;;  %2176 = vrcp.f32 %v880_v22 }
 0x3a1   : > { %v891_v18 = vpack.c.bf16 %v887_v19, %v887_v19  ;;  %951 = vmatpush.bf16.msra.mxu0 %v942_v21 }
 0x3a4   : > { %1906 = vmatmul.msk.bf16.vlgmr.msra.gmra.mxu0 %vm753_vm2, %v891_v18 }
 0x3a5   : > { %1154 = vmatpush.bf16.msrb.mxu0 %v2041_v13 }
 0x3a6   : > { %v2177_v23 = vpop.eup %2176 }
 0x3a7   : > { %v888_v24 = vmul.f32 %v2177_v23, %v2169_v3 }
 0x3a9   : > { %v892_v27 = vpack.c.bf16 %v888_v24, %v888_v24  ;;  %1155 = vmatpush.bf16.msrb.mxu0 %v2040_v16  ;;  %v2152_v24 = vld [vmem:[%s2913_s12] ss:$0 sm:$0xff] }
 0x3ad   : > { %v874_v28 = vpop.xlane.xlu1 %873 }
 0x3ae   : > { %2178 = vrcp.f32 %v874_v28 }
 0x3b2   : > { %v958_v25 = vpop.permute.xlu0 %957 }
 0x3b3   : > { %v963_v26 = vsel %vm898_vm3, %v958_v25, 0 }
 0x3b4   : > { %972 = vmatpush.bf16.msra.mxu1 %v963_v26  ;;  %v2179_v31 = vpop.eup %2178  ;;  %v2153_v26 = vld [vmem:[#allocation7] ss:$0 sm:$0xff] }
 0x3b5   : > { %v886_v32 = vmul.f32 %v2179_v31, %v2171_v8  ;;  %v2039_v31 = vld [vmem:[%s2911_s10 + $0x8] sm:$0xff] }
 0x3b6   : > { %1156 = vmatpush.bf16.msrb.mxu0 %v2039_v31 }
 0x3b7   : > { %1907 = vmatmul.msk.bf16.vlgmr.msra.gmra.mxu1 %vm753_vm2, %v892_v27  ;;  %v890_v35 = vpack.c.bf16 %v886_v32, %v886_v32  ;;  %v2038_v32 = vld [vmem:[%s2911_s10] sm:$0xff] }
 0x3ba   : > { %v894_v29 = vpop.permute.xlu0 %893  ;;  %1157 = vmatpush.bf16.msrb.mxu0 %v2038_v32 }
 0x3bb   : > { %v900_v30 = vsel %vm898_vm3, %v894_v29, 0 }
 0x3bc   : > { %909 = vmatpush.bf16.msrb.mxu2 %v900_v30 }
 0x3c0   : > { %1024 = vmatpush.bf16.msra.mxu2 %v2035_v48 }
 0x3c4   : > { %1025 = vmatpush.bf16.msra.mxu2 %v2034_v49 }
 0x3c5   : > { %v916_v33 = vpop.permute.xlu1 %915 }
 0x3c6   : > { %v921_v34 = vsel %vm898_vm3, %v916_v33, 0  ;;  %v2154_v33 = vld [vmem:[%s2910_s9] ss:$0 sm:$0xff] }
 0x3c7   : > { %930 = vmatpush.bf16.msrb.mxu3 %v921_v34 }
 0x3ca   : > { %1905 = vmatmul.msk.bf16.vlgmr.msrb.gmra.mxu3 %vm753_vm2, %v890_v35 }
 0x3cb   : > { %1101 = vmatpush.bf16.msra.mxu3 %v2037_v11 }
 0x3cf   : > { %1102 = vmatpush.bf16.msra.mxu3 %v2036_v12 }
 0x3f0   : > { %v871_v36 = vpop.xlane.xlu1 %870 }
 0x3f1   : > { %2180 = vrcp.f32 %v871_v36 }
 0x3f2   : > { %2182 = vrcp.f32 %v2422_v63  ;;  %v2157_v63 = vld [vmem:[#allocation8] ss:$0 sm:$0xff] }
 0x3f7   : > { %v2181_v37 = vpop.eup %2180 }
 0x3f8   : > { %v885_v38 = vmul.f32 %v2181_v37, %v2173_v14  ;;  %v2183_v0 = vpop.eup %2182 }
 0x3f9   : > { %v1036_v1 = vmul.f32 32.0, %v2183_v0  ;;  %vm1040_vm5 = vweird.f32 %v2183_v0 }
 0x3fa   : > { %v889_v39 = vpack.c.bf16 %v885_v38, %v885_v38 }
 0x3fb   : > { %v1037_v2 = vsub.f32 1.0, %v1036_v1 }
 0x3fc   : > { %1904 = vmatmul.msk.bf16.vlgmr.msrb.gmra.mxu2 %vm753_vm2, %v889_v39  ;;  %v2155_v39 = vld [vmem:[%s2912_s11] ss:$0 sm:$0xff] }
 0x3fd   : > { %v1038_v3 = vmul.f32 %v2183_v0, %v1037_v2 }
 0x3ff   : > { %v1039_v4 = vadd.f32 %v2183_v0, %v1038_v3 }
 0x401   : > { %v2702_v5 = vsel %vm1040_vm5, %v2183_v0, %v1039_v4  ;;  %v2158_v4 = vld [vmem:[#allocation5 + $0x1] ss:$0 sm:$0xff]  ;;  %vm1753_vm5 = vcmask 16384  }
 0x421   : > { %v953_v40 = vpop.f32.mrf.mxu0 }
 0x422   : > { %983 = vrot.lane.b32.xlu0 %v953_v40, %s2419_s27 }
 0x429   : > { %v955_v41 = vpop.f32.mrf.mxu0 }
 0x434   : > { %v974_v42 = vpop.f32.mrf.mxu1 }
 0x43c   : > { %v976_v43 = vpop.f32.mrf.mxu1 }
 0x44d   : > { %v932_v44 = vpop.f32.mrf.mxu3 }
 0x44e   : > { %979 = vrot.lane.b32.xlu2 %v932_v44, %s2420_s28 }
 0x455   : > { %v934_v45 = vpop.f32.mrf.mxu3 }
 0x456   : > { %987 = vrot.lane.b32.xlu2 %v974_v42, %s2421_s30 }
 0x47f   : > { %v911_v46 = vpop.f32.mrf.mxu2 }
 0x487   : > { %v913_v47 = vpop.f32.mrf.mxu2 }
 0x494   : > { %v984_v52 = vpop.permute.xlu0 %983 }
 0x4a8   : > { %v980_v50 = vpop.permute.xlu2 %979 }
 0x4a9   : > { %v990_v51 = vsel %vm753_vm2, %v911_v46, %v980_v50  ;;  %v2043_v50 = vld [vmem:[%s2905_s4 + $0x18] sm:$0xff] }
 0x4aa   : > { %v991_v54 = vsel %vm666_vm0, %v990_v51, %v984_v52  ;;  %1228 = vmatpush.bf16.msrb.mxu1 %v2043_v50  ;;  %v2042_v51 = vld [vmem:[%s2905_s4 + $0x10] sm:$0xff] }
 0x4ae   : > { %1229 = vmatpush.bf16.msrb.mxu1 %v2042_v51 }
 0x4b0   : > { %v988_v53 = vpop.permute.xlu2 %987 }
 0x4b1   : > { %v993_v55 = vsel %vm992_vm4, %v991_v54, %v988_v53 }
 0x4b2   : > { %v994_v56 = vpack.c.bf16 %v993_v55, %v993_v55 }
 0x4b4   : > { %1916 = vmatmul.msk.bf16.vlgmr.msra.gmra.mxu2 %vm709_vm1, %v994_v56 }
 0x537   : > { %v1027_v58 = vpop.f32.mrf.mxu2 }
 0x538   : > { %v1028_v59 = vadd.f32 %v2151_v57, %v1027_v58 }
 0x53a   : > { %v1031_v60 = vadd.f32 %v1028_v59, %v2632_v9 }
 0x53c   : > { %v1032_v61 = vsel %vm709_vm1, %v1031_v60, 0.0 }
 0x53d   : > { %1033 = vadd.xlane.f32.xlu0 %v1032_v61  ;;  %v2156_v61 = vld [vmem:[%s2915_s14] ss:$0 sm:$0xff] }
 0x53f   : > { %v1029_v62 = vpop.f32.mrf.mxu2 }
 0x5b0   : > { %v1034_v6 = vpop.xlane.xlu0 %1033 }
 0x5b1   : > { %v1042_v7 = vmul.f32 %v2702_v5, %v1034_v6 }
 0x5b3   : > { %v1043_v8 = vsub.f32 %v1031_v60, %v1042_v7 }
 0x5b5   : > { %v1044_v10 = vmul.f32 %v1043_v8, %v1043_v8 }
 0x5b7   : > { %v1045_v9 = vsel %vm709_vm1, %v1044_v10, 0.0 }
 0x5b8   : > { %1046 = vadd.xlane.f32.xlu2 %v1045_v9 }
 0x62b   : > { %v1047_v14 = vpop.xlane.xlu2 %1046 }
 0x62c   : > { %v1048_v15 = vmul.f32 %v1047_v14, %v2702_v5 }
 0x62e   : > { %v1049_v17 = vadd.f32 1e-05, %v1048_v15 }
 0x630   : > { %2184 = vrsqrt.f32 %v1049_v17  ;;  %vm1056_vm7 = vweird.f32 %v1049_v17 }
 0x636   : > { %v2185_v19 = vpop.eup %2184 }
 0x637   : > { %v1051_v20 = vmul.f32 %v2185_v19, %v1049_v17  ;;  %vm1057_vm6 = vweird.f32 %v2185_v19 }
 0x638   : > { %vm1058_vm8 = vmor %vm1056_vm7, %vm1057_vm6 }
 0x639   : > { %v1052_v21 = vmul.f32 %v2185_v19, %v1051_v20 }
 0x63b   : > { %v1053_v18 = vmul.f32 0.5, %v1052_v21 }
 0x63d   : > { %v1054_v22 = vsub.f32 1.5, %v1053_v18 }
 0x63f   : > { %v1055_v23 = vmul.f32 %v2185_v19, %v1054_v22 }
 0x641   : > { %v1059_v25 = vsel %vm1058_vm8, %v2185_v19, %v1055_v23 }
 0x642   : > { %v1060_v27 = vmul.f32 %v1059_v25, %v1043_v8 }
 0x644   : > { %v1065_v28 = vmul.f32 %v2152_v24, %v1060_v27 }
 0x646   : > { %v1070_v29 = vadd.f32 %v2153_v26, %v1065_v28 }
 0x648   : > { %v1071_v30 = vpack.c.bf16 %v1070_v29, %v1070_v29 }
 0x64a   : > { %1925 = vmatmul.msk.bf16.vlgmr.msra.gmra.mxu3 %vm709_vm1, %v1071_v30 }
 0x6cd   : > { %v1104_v34 = vpop.f32.mrf.mxu3 }
 0x6ce   : > { %v1105_v35 = vadd.f32 %v2154_v33, %v1104_v34 }
 0x6d0   : > { %v1108_v36 = vmax.f32 %v1105_v35, 0.0 }
 0x6d2   : > { %v1109_v37 = vpack.c.bf16 %v1108_v36, %v1108_v36 }
 0x6d4   : > { %1942 = vmatmul.msk.bf16.vlgmr.msrb.gmra.mxu0 %vm1146_vm9, %v1109_v37 }
 0x6d5   : > { %v1106_v38 = vpop.f32.mrf.mxu3 }
 0x751   : > { %v1159_v40 = vpop.f32.mrf.mxu0 }
 0x752   : > { %v1160_v41 = vadd.f32 %v2155_v39, %v1159_v40 }
 0x754   : > { %v1163_v42 = vadd.f32 %v1160_v41, %v1070_v29 }
 0x756   : > { %v1164_v43 = vsel %vm709_vm1, %v1163_v42, 0.0 }
 0x757   : > { %1165 = vadd.xlane.f32.xlu1 %v1164_v43 }
 0x759   : > { %v1161_v44 = vpop.f32.mrf.mxu0 }
 0x7ca   : > { %v1166_v45 = vpop.xlane.xlu1 %1165 }
 0x7cb   : > { %v1167_v46 = vmul.f32 %v1166_v45, %v2702_v5 }
 0x7cd   : > { %v1168_v47 = vsub.f32 %v1163_v42, %v1167_v46 }
 0x7cf   : > { %v1169_v48 = vmul.f32 %v1168_v47, %v1168_v47 }
 0x7d1   : > { %v1170_v49 = vsel %vm709_vm1, %v1169_v48, 0.0 }
 0x7d2   : > { %1171 = vadd.xlane.f32.xlu1 %v1170_v49 }
 0x845   : > { %v1172_v52 = vpop.xlane.xlu1 %1171 }
 0x846   : > { %v1173_v53 = vmul.f32 %v1172_v52, %v2702_v5 }
 0x848   : > { %v1174_v54 = vadd.f32 1e-05, %v1173_v53 }
 0x84a   : > { %2186 = vrsqrt.f32 %v1174_v54  ;;  %vm1181_vm11 = vweird.f32 %v1174_v54 }
 0x850   : > { %v2187_v55 = vpop.eup %2186 }
 0x851   : > { %v1176_v56 = vmul.f32 %v2187_v55, %v1174_v54  ;;  %vm1182_vm10 = vweird.f32 %v2187_v55 }
 0x852   : > { %vm1183_vm12 = vmor %vm1181_vm11, %vm1182_vm10 }
 0x853   : > { %v1177_v57 = vmul.f32 %v2187_v55, %v1176_v56 }
 0x855   : > { %v1178_v58 = vmul.f32 0.5, %v1177_v57 }
 0x857   : > { %v1179_v59 = vsub.f32 1.5, %v1178_v58 }
 0x859   : > { %v1180_v60 = vmul.f32 %v2187_v55, %v1179_v59 }
 0x85b   : > { %v1184_v62 = vsel %vm1183_vm12, %v2187_v55, %v1180_v60 }
 0x85c   : > { %v1185_v0 = vmul.f32 %v1184_v62, %v1168_v47 }
 0x85e   : > { %v1190_v1 = vmul.f32 %v2156_v61, %v1185_v0 }
 0x860   : > { %v2749_v2 = vadd.f32 %v2157_v63, %v1190_v1 }
 0x862   : > { %v1196_v3 = vpack.c.bf16 %v2749_v2, %v2749_v2 }
 0x864   : > { %1955 = vmatmul.msk.bf16.vlgmr.msrb.gmra.mxu1 %vm709_vm1, %v1196_v3 }
 0x8e1   : > { %v1231_v6 = vpop.f32.mrf.mxu1 }
 0x8e2   : > { %v1232_v7 = vadd.f32 %v2158_v4, %v1231_v6 }
 0x8e4   : > { %1242 = vrot.lane.b32.xlu2 %v1232_v7, %s2414_s5  ;;  %1239 = vrot.lane.b32.xlu0 %v1232_v7, %s2416_s16  ;;  %v1253_v18 = vpack.c.bf16 %v1232_v7, %v1232_v7  ;;  %v1245_v38 = vmul.f32 0.35355338, %v1232_v7  ;;  %s1764_s5 = scalar_lea.hbm %s2956_s19, %s2540_s0 }
 0x8e5   : > { %1236 = vrot.lane.b32.xlu1 %v1232_v7, %s2415_s21 }
 0x8e6   : > { %v1258_v22 = vunpack.c.l.b16 %v1253_v18  ;;  %v1249_v39 = vpack.c.bf16 %v1245_v38, %v1245_v38 }
 0x8e8   : > { %v2766_v23 = vpack.c.b16 %v1258_v22, %v1258_v22 }
 0x8e9   : > { %v1233_v8 = vpop.f32.mrf.mxu1 }
 0x93e   : > { %v1243_v10 = vpop.permute.xlu2 %1242 }
 0x93f   : > { %v1256_v9 = vpack.c.bf16 %v1243_v10, %v1243_v10  ;;  %v1248_v26 = vmul.f32 0.35355338, %v1243_v10 }
 0x941   : > { %v1330_v11 = vunpack.c.l.b16 %v1256_v9  ;;  %v1252_v27 = vpack.c.bf16 %v1248_v26, %v1248_v26 }
 0x943   : > { %v1331_v12 = vpack.c.b16 %v1330_v11, %v1330_v11 }
 0x945   : > { %1332 = vrot.lane.b32.xlu2 %v1331_v12, %s2417_s17 }
 0x956   : > { %v1240_v13 = vpop.permute.xlu0 %1239 }
 0x957   : > { %v1255_v14 = vpack.c.bf16 %v1240_v13, %v1240_v13  ;;  %v1237_v15 = vpop.permute.xlu1 %1236  ;;  %v1247_v32 = vmul.f32 0.35355338, %v1240_v13 }
 0x958   : > { %v1254_v16 = vpack.c.bf16 %v1237_v15, %v1237_v15  ;;  %v1246_v33 = vmul.f32 0.35355338, %v1237_v15 }
 0x959   : > { %v1306_v17 = vunpack.c.l.b16 %v1255_v14  ;;  %v1251_v34 = vpack.c.bf16 %v1247_v32, %v1247_v32 }
 0x95a   : > { %v1282_v19 = vunpack.c.l.b16 %v1254_v16  ;;  %v1250_v35 = vpack.c.bf16 %v1246_v33, %v1246_v33 }
 0x95b   : > { %v2758_v20 = vpack.c.b16 %v1306_v17, %v1306_v17 }
 0x95c   : > { %v2760_v21 = vpack.c.b16 %v1282_v19, %v1282_v19 }
 0x95d   : > { %1308 = vrot.lane.b32.xlu1 %v2758_v20, %s2417_s17 }
 0x95e   : > { %1284 = vrot.lane.b32.xlu0 %v2760_v21, %s2417_s17 }
 0x966   : > { %1260 = vrot.lane.b32.xlu0 %v2766_v23, %s2417_s17  ;;  %s2957_s17 = sld [smem:[#allocation28_spill]] }
 0x99f   : > { %v1333_v24 = vpop.permute.xlu2 %1332 }
 0x9a0   : > { %v1338_v25 = vsel %vm753_vm2, %v1333_v24, 0 }
 0x9a1   : > { %1347 = vmatpush.bf16.xpose.msra.mxu1 %v1338_v25 }
 0x9a8   : > { %1959 = vmatmul.msk.bf16.vlgmr.msra.gmra.mxu1 %vm753_vm2, %v1252_v27 }
 0x9cf   : > { %v1309_v28 = vpop.permute.xlu1 %1308 }
 0x9d0   : > { %v1285_v29 = vpop.permute.xlu0 %1284  ;;  %v1314_v30 = vsel %vm753_vm2, %v1309_v28, 0 }
 0x9d1   : > { %v1290_v31 = vsel %vm753_vm2, %v1285_v29, 0  ;;  %1323 = vmatpush.bf16.xpose.msra.mxu0 %v1314_v30 }
 0x9d2   : > { %1299 = vmatpush.bf16.xpose.msrb.mxu3 %v1290_v31 }
 0x9d8   : > { %v1261_v36 = vpop.permute.xlu0 %1260  ;;  %1958 = vmatmul.msk.bf16.vlgmr.msra.gmra.mxu0 %vm753_vm2, %v1251_v34 }
 0x9d9   : > { %v1266_v37 = vsel %vm753_vm2, %v1261_v36, 0  ;;  %1957 = vmatmul.msk.bf16.vlgmr.msrb.gmra.mxu3 %vm753_vm2, %v1250_v35 }
 0x9da   : > { %1275 = vmatpush.bf16.xpose.msrb.mxu2 %v1266_v37 }
 0x9e1   : > { %1956 = vmatmul.msk.bf16.vlgmr.msrb.gmra.mxu2 %vm753_vm2, %v1249_v39 }
 0xa25   : > { %v1349_v40 = vpop.f32.mrf.mxu1 }
 0xa26   : > { %v1362_v41 = vsel %vm753_vm2, %v1349_v40, -inf }
 0xa27   : > { %1363 = vmax.xlane.f32.xlu0 %v1362_v41 }
 0xa2d   : > { %v1351_v42 = vpop.f32.mrf.mxu1 }
 0xa2e   : > { %v2045_v42 = vld [vmem:[%s2907_s6 + $0x18] sm:$0xff] }
 0xa55   : > { %v1325_v43 = vpop.f32.mrf.mxu0 }
 0xa56   : > { %v1359_v44 = vsel %vm753_vm2, %v1325_v43, -inf }
 0xa57   : > { %1360 = vmax.xlane.f32.xlu2 %v1359_v44 }
 0xa5c   : > { %v1301_v45 = vpop.f32.mrf.mxu3 }
 0xa5d   : > { %v1356_v46 = vsel %vm753_vm2, %v1301_v45, -inf  ;;  %v1327_v47 = vpop.f32.mrf.mxu0 }
 0xa5e   : > { %1357 = vmax.xlane.f32.xlu1 %v1356_v46 }
 0xa64   : > { %v1277_v48 = vpop.f32.mrf.mxu2  ;;  %v1303_v49 = vpop.f32.mrf.mxu3 }
 0xa65   : > { %v1353_v50 = vsel %vm753_vm2, %v1277_v48, -inf }
 0xa66   : > { %1354 = vmax.xlane.f32.xlu1 %v1353_v50 }
 0xa6c   : > { %v1279_v51 = vpop.f32.mrf.mxu2 }
 0xa6d   : > { %v2159_v51 = vld [vmem:[%s2908_s7 + $0x1] ss:$0 sm:$0xff] }
 0xa9a   : > { %v1364_v52 = vpop.xlane.xlu0 %1363 }
 0xa9b   : > { %v1368_v53 = vsub.f32 %v1349_v40, %v1364_v52 }
 0xa9d   : > { %v1375_v54 = vmul.f32 1.442695, %v1368_v53 }
 0xa9f   : > { %2188 = vpow2.f32 %v1375_v54 }
 0xaa5   : > { %v2189_v55 = vpop.eup %2188 }
 0xaa6   : > { %v1386_v56 = vsel %vm753_vm2, %v2189_v55, 0.0 }
 0xaa7   : > { %1387 = vadd.xlane.f32.xlu1 %v1386_v56 }
 0xac0   : > { %1464 = vrot.lane.b32.xlu1 %v1331_v12, %s2418_s18 }
 0xaca   : > { %v1361_v57 = vpop.xlane.xlu2 %1360 }
 0xacb   : > { %v1367_v58 = vsub.f32 %v1325_v43, %v1361_v57  ;;  %v2044_v43 = vld [vmem:[%s2907_s6 + $0x10] sm:$0xff] }
 0xacd   : > { %v1373_v59 = vmul.f32 1.442695, %v1367_v58 }
 0xacf   : > { %2190 = vpow2.f32 %v1373_v59 }
 0xad1   : > { %v1358_v60 = vpop.xlane.xlu1 %1357 }
 0xad2   : > { %v1366_v61 = vsub.f32 %v1301_v45, %v1358_v60 }
 0xad4   : > { %v1371_v62 = vmul.f32 1.442695, %v1366_v61 }
 0xad5   : > { %v2191_v63 = vpop.eup %2190 }
 0xad6   : > { %2192 = vpow2.f32 %v1371_v62  ;;  %v1383_v0 = vsel %vm753_vm2, %v2191_v63, 0.0  ;;  %v2047_v62 = vld [vmem:[%s2909_s8 + $0x18] sm:$0xff] }
 0xad7   : > { %1384 = vadd.xlane.f32.xlu0 %v1383_v0 }
 0xad9   : > { %v1355_v4 = vpop.xlane.xlu1 %1354 }
 0xada   : > { %v1365_v6 = vsub.f32 %v1277_v48, %v1355_v4 }
 0xadc   : > { %v2193_v1 = vpop.eup %2192  ;;  %v1369_v7 = vmul.f32 1.442695, %v1365_v6 }
 0xadd   : > { %v1380_v3 = vsel %vm753_vm2, %v2193_v1, 0.0 }
 0xade   : > { %1381 = vadd.xlane.f32.xlu2 %v1380_v3  ;;  %2194 = vpow2.f32 %v1369_v7  ;;  %v2050_v3 = vld [vmem:[%s2911_s10 + $0x30] sm:$0xff] }
 0xae4   : > { %v2195_v8 = vpop.eup %2194 }
 0xae5   : > { %v1377_v10 = vsel %vm753_vm2, %v2195_v8, 0.0 }
 0xaeb   : > { %1443 = vrot.lane.b32.xlu0 %v2758_v20, %s2418_s18 }
 0xaf6   : > { %1422 = vrot.lane.b32.xlu2 %v2760_v21, %s2418_s18 }
 0xafe   : > { %1401 = vrot.lane.b32.xlu2 %v2766_v23, %s2418_s18 }
 0xb15   : > { %1378 = vadd.xlane.f32.xlu0 %v1377_v10 }
 0xb1a   : > { %v1388_v9 = vpop.xlane.xlu1 %1387 }
 0xb1b   : > { %2196 = vrcp.f32 %v1388_v9 }
 0xb21   : > { %v2197_v11 = vpop.eup %2196 }
 0xb22   : > { %v1396_v12 = vmul.f32 %v2197_v11, %v2189_v55 }
 0xb24   : > { %v1400_v15 = vpack.c.bf16 %v1396_v12, %v1396_v12  ;;  %v2160_v12 = vld [vmem:[%s2913_s12 + $0x1] ss:$0 sm:$0xff] }
 0xb32   : > { %v1465_v13 = vpop.permute.xlu1 %1464 }
 0xb33   : > { %v1470_v14 = vsel %vm898_vm3, %v1465_v13, 0 }
 0xb34   : > { %1479 = vmatpush.bf16.msrb.mxu1 %v1470_v14  ;;  %v2161_v14 = vld [vmem:[#allocation7 + $0x1] ss:$0 sm:$0xff] }
 0xb37   : > { %1963 = vmatmul.msk.bf16.vlgmr.msrb.gmra.mxu1 %vm753_vm2, %v1400_v15 }
 0xb4a   : > { %v1385_v16 = vpop.xlane.xlu0 %1384 }
 0xb51   : > { %v1382_v17 = vpop.xlane.xlu2 %1381 }
 0xb52   : > { %2198 = vrcp.f32 %v1382_v17 }
 0xb53   : > { %2200 = vrcp.f32 %v1385_v16 }
 0xb58   : > { %v2199_v19 = vpop.eup %2198 }
 0xb59   : > { %v2201_v20 = vpop.eup %2200  ;;  %v1394_v21 = vmul.f32 %v2199_v19, %v2193_v1  ;;  %v1423_v18 = vpop.permute.xlu2 %1422 }
 0xb5a   : > { %v1428_v22 = vsel %vm898_vm3, %v1423_v18, 0  ;;  %v1395_v24 = vmul.f32 %v2201_v20, %v2191_v63  ;;  %v2051_v63 = vld [vmem:[%s2911_s10 + $0x38] sm:$0xff]  ;;  %v2049_v20 = vld [vmem:[%s2911_s10 + $0x28] sm:$0xff]  ;;  %v2162_v18 = vld [vmem:[%s2910_s9 + $0x1] ss:$0 sm:$0xff] }
 0xb5b   : > { %v1398_v23 = vpack.c.bf16 %v1394_v21, %v1394_v21  ;;  %1437 = vmatpush.bf16.msra.mxu3 %v1428_v22  ;;  %v2048_v21 = vld [vmem:[%s2911_s10 + $0x20] sm:$0xff] }
 0xb5c   : > { %v1399_v27 = vpack.c.bf16 %v1395_v24, %v1395_v24 }
 0xb5d   : > { %v1444_v25 = vpop.permute.xlu0 %1443 }
 0xb5e   : > { %1961 = vmatmul.msk.bf16.vlgmr.msra.gmra.mxu3 %vm753_vm2, %v1398_v23  ;;  %v1449_v26 = vsel %vm898_vm3, %v1444_v25, 0 }
 0xb5f   : > { %1458 = vmatpush.bf16.msrb.mxu0 %v1449_v26  ;;  %1606 = vmatpush.bf16.msrb.mxu3 %v2047_v62 }
 0xb61   : > { %v1402_v28 = vpop.permute.xlu2 %1401 }
 0xb62   : > { %v1407_v29 = vsel %vm898_vm3, %v1402_v28, 0  ;;  %1962 = vmatmul.msk.bf16.vlgmr.msrb.gmra.mxu0 %vm753_vm2, %v1399_v27  ;;  %v2163_v27 = vld [vmem:[%s2912_s11 + $0x1] ss:$0 sm:$0xff] }
 0xb63   : > { %1416 = vmatpush.bf16.msra.mxu2 %v1407_v29  ;;  %1660 = vmatpush.bf16.msra.mxu0 %v2051_v63 }
 0xb67   : > { %1532 = vmatpush.bf16.msrb.mxu2 %v2045_v42  ;;  %1661 = vmatpush.bf16.msra.mxu0 %v2050_v3 }
 0xb6b   : > { %1533 = vmatpush.bf16.msrb.mxu2 %v2044_v43  ;;  %1662 = vmatpush.bf16.msra.mxu0 %v2049_v20 }
 0xb6f   : > { %1663 = vmatpush.bf16.msra.mxu0 %v2048_v21 }
 0xb88   : > { %v1379_v30 = vpop.xlane.xlu0 %1378 }
 0xb89   : > { %2202 = vrcp.f32 %v1379_v30 }
 0xb8f   : > { %v2203_v31 = vpop.eup %2202 }
 0xb90   : > { %v1393_v32 = vmul.f32 %v2203_v31, %v2195_v8 }
 0xb92   : > { %v1397_v33 = vpack.c.bf16 %v1393_v32, %v1393_v32 }
 0xb94   : > { %1960 = vmatmul.msk.bf16.vlgmr.msra.gmra.mxu2 %vm753_vm2, %v1397_v33 }
 0xbb4   : > { %v1481_v34 = vpop.f32.mrf.mxu1 }
 0xbbc   : > { %v1483_v35 = vpop.f32.mrf.mxu1 }
 0xbdf   : > { %v1460_v36 = vpop.f32.mrf.mxu0 }
 0xbe0   : > { %1490 = vrot.lane.b32.xlu2 %v1460_v36, %s2419_s27  ;;  %s643_s27 = scalar_lea.vmem [#allocation10], %s642_s29 }
 0xbe1   : > { %v1439_v37 = vpop.f32.mrf.mxu3 }
 0xbe2   : > { %1486 = vrot.lane.b32.xlu1 %v1439_v37, %s2420_s28  ;;  %s1766_s28 = sshll.u32 %s643_s27, 4  ;;  %s1767_s28 = int_to_ptr.vmem [resolvable:$true] %s1766_s28 }
 0xbe7   : > { %v1462_v38 = vpop.f32.mrf.mxu0 }
 0xbe9   : > { %v1441_v39 = vpop.f32.mrf.mxu3 }
 0xbea   : > { %1494 = vrot.lane.b32.xlu1 %v1481_v34, %s2421_s30  ;;  %v2053_v39 = vld [vmem:[%s2954_s22 + $0x8] sm:$0xff]  ;;  %s1768_s30 = sshll.u32 %s1764_s5, 4  ;;  %s1769_s30 = int_to_ptr.hbm [resolvable:$true] %s1768_s30 }
 0xbeb   : > { %1746 = vmatpush.bf16.msra.mxu1 %v2053_v39  ;;  %s2344_s24 = sshra.s32 %s1769_s30, 4  ;;  %s2345_s24 = int_to_ptr.hbm [resolvable:$true] %s2344_s24 }
 0xbec   : > { %s2346_s25 = scalar_lea.hbm %s2345_s24, 1  ;;  %p2351_p3 = scmp.lt.s32.totalorder %s2345_s24, %s2956_s19 }
 0xbed   : > { %p2347_p0 = scmp.ne.s32.totalorder %s2345_s24, %s2346_s25  ;;  %p2352_p4 = scmp.lt.s32.totalorder %s2350_s20, %s2346_s25 }
 0xbef   : > { %p2348_p1 = pnand %p2347_p0, %p2557_p5  ;;  %p2353_p7 = por %p2352_p4, %p2351_p3 }
 0xbf1   : > { %p2349_p2 = pneg %p2348_p1 }
 0xbf3   : > { %p2354_p8 = pnand %p2353_p7, %p2349_p2 }
 0xc17   : > { %v1418_v40 = vpop.f32.mrf.mxu2 }
 0xc1f   : > { %v1420_v41 = vpop.f32.mrf.mxu2 }
 0xc20   : > { %v2052_v41 = vld [vmem:[%s2954_s22] sm:$0xff] }
 0xc21   : > { %1747 = vmatpush.bf16.msra.mxu1 %v2052_v41 }
 0xc3a   : > { %v1491_v46 = vpop.permute.xlu2 %1490 }
 0xc54   : > { %v1487_v44 = vpop.permute.xlu1 %1486 }
 0xc55   : > { %v1497_v45 = vsel %vm753_vm2, %v1418_v40, %v1487_v44 }
 0xc56   : > { %v1498_v48 = vsel %vm666_vm0, %v1497_v45, %v1491_v46  ;;  %v2423_v46 = vmov 8.0  }
 0xc5c   : > { %v1495_v47 = vpop.permute.xlu1 %1494 }
 0xc5d   : > { %v1499_v49 = vsel %vm992_vm4, %v1498_v48, %v1495_v47 }
 0xc5e   : > { %v1500_v50 = vpack.c.bf16 %v1499_v49, %v1499_v49 }
 0xc60   : > { %1977 = vmatmul.msk.bf16.vlgmr.msrb.gmra.mxu2 %vm709_vm1, %v1500_v50 }
 0xce3   : > { %v1535_v52 = vpop.f32.mrf.mxu2 }
 0xce4   : > { %v1536_v53 = vadd.f32 %v2159_v51, %v1535_v52  ;;  %v2165_v52 = vld [vmem:[#allocation8 + $0x1] ss:$0 sm:$0xff] }
 0xce6   : > { %v1539_v54 = vadd.f32 %v1536_v53, %v2749_v2  ;;  %v2046_v2 = vld [vmem:[%s2909_s8 + $0x10] sm:$0xff] }
 0xce7   : > { %1607 = vmatpush.bf16.msrb.mxu3 %v2046_v2 }
 0xce8   : > { %v1540_v55 = vsel %vm709_vm1, %v1539_v54, 0.0 }
 0xce9   : > { %1541 = vadd.xlane.f32.xlu2 %v1540_v55 }
 0xceb   : > { %v1537_v56 = vpop.f32.mrf.mxu2 }
 0xd5c   : > { %v1542_v57 = vpop.xlane.xlu2 %1541 }
 0xd5d   : > { %v1543_v58 = vmul.f32 %v1542_v57, %v2702_v5 }
 0xd5f   : > { %v1544_v59 = vsub.f32 %v1539_v54, %v1543_v58 }
 0xd61   : > { %v1545_v60 = vmul.f32 %v1544_v59, %v1544_v59 }
 0xd63   : > { %v1546_v61 = vsel %vm709_vm1, %v1545_v60, 0.0 }
 0xd64   : > { %1547 = vadd.xlane.f32.xlu1 %v1546_v61 }
 0xdd7   : > { %v1548_v0 = vpop.xlane.xlu1 %1547 }
 0xdd8   : > { %v1549_v1 = vmul.f32 %v1548_v0, %v2702_v5 }
 0xdda   : > { %v1550_v4 = vadd.f32 1e-05, %v1549_v1 }
 0xddc   : > { %2204 = vrsqrt.f32 %v1550_v4  ;;  %vm1557_vm14 = vweird.f32 %v1550_v4 }
 0xde2   : > { %v2205_v6 = vpop.eup %2204 }
 0xde3   : > { %v1552_v7 = vmul.f32 %v2205_v6, %v1550_v4  ;;  %vm1558_vm13 = vweird.f32 %v2205_v6 }
 0xde4   : > { %vm1559_vm15 = vmor %vm1557_vm14, %vm1558_vm13 }
 0xde5   : > { %v1553_v8 = vmul.f32 %v2205_v6, %v1552_v7  ;;  %v1724_v7 = vld [vmem:[%s2957_s17] sm:$0x1] }
 0xde7   : > { %v1554_v10 = vmul.f32 0.5, %v1553_v8 }
 0xde9   : > { %v1555_v9 = vsub.f32 1.5, %v1554_v10 }
 0xdeb   : > { %v1556_v11 = vmul.f32 %v2205_v6, %v1555_v9 }
 0xded   : > { %v1560_v13 = vsel %vm1559_vm15, %v2205_v6, %v1556_v11 }
 0xdee   : > { %v1561_v15 = vmul.f32 %v1560_v13, %v1544_v59 }
 0xdf0   : > { %v1567_v16 = vmul.f32 %v2160_v12, %v1561_v15 }
 0xdf2   : > { %v1573_v17 = vadd.f32 %v2161_v14, %v1567_v16 }
 0xdf4   : > { %v1574_v19 = vpack.c.bf16 %v1573_v17, %v1573_v17 }
 0xdf6   : > { %1992 = vmatmul.msk.bf16.vlgmr.msrb.gmra.mxu3 %vm709_vm1, %v1574_v19 }
 0xe79   : > { %v1609_v22 = vpop.f32.mrf.mxu3 }
 0xe7a   : > { %v1610_v23 = vadd.f32 %v2162_v18, %v1609_v22 }
 0xe7c   : > { %v1613_v24 = vmax.f32 %v1610_v23, 0.0 }
 0xe7e   : > { %v1614_v25 = vpack.c.bf16 %v1613_v24, %v1613_v24 }
 0xe80   : > { %2018 = vmatmul.msk.bf16.vlgmr.msra.gmra.mxu0 %vm1146_vm9, %v1614_v25 }
 0xe81   : > { %v1611_v26 = vpop.f32.mrf.mxu3 }
 0xefd   : > { %v1665_v28 = vpop.f32.mrf.mxu0 }
 0xefe   : > { %v1666_v29 = vadd.f32 %v2163_v27, %v1665_v28 }
 0xf00   : > { %v1669_v30 = vadd.f32 %v1666_v29, %v1573_v17 }
 0xf02   : > { %v1670_v31 = vsel %vm709_vm1, %v1669_v30, 0.0 }
 0xf03   : > { %1671 = vadd.xlane.f32.xlu0 %v1670_v31 }
 0xf05   : > { %v1667_v32 = vpop.f32.mrf.mxu0 }
 0xf76   : > { %v1672_v33 = vpop.xlane.xlu0 %1671 }
 0xf77   : > { %v1673_v34 = vmul.f32 %v1672_v33, %v2702_v5 }
 0xf79   : > { %v1674_v35 = vsub.f32 %v1669_v30, %v1673_v34 }
 0xf7b   : > { %v1675_v36 = vmul.f32 %v1674_v35, %v1674_v35 }
 0xf7d   : > { %v1676_v37 = vsel %vm709_vm1, %v1675_v36, 0.0 }
 0xf7e   : > { %1677 = vadd.xlane.f32.xlu0 %v1676_v37 }
 0xff1   : > { %v1678_v38 = vpop.xlane.xlu0 %1677 }
 0xff2   : > { %v1679_v40 = vmul.f32 %v1678_v38, %v2702_v5  ;;  %v2164_v5 = vld [vmem:[%s2915_s14 + $0x1] ss:$0 sm:$0xff] }
 0xff4   : > { %v1680_v42 = vadd.f32 1e-05, %v1679_v40 }
 0xff6   : > { %2206 = vrsqrt.f32 %v1680_v42  ;;  %vm1687_vm2 = vweird.f32 %v1680_v42 }
 0xff7   : > { %2208 = vrcp.f32 %v2423_v46 }
 0xffc   : > { %v2207_v43 = vpop.eup %2206 }
 0xffd   : > { %v1682_v44 = vmul.f32 %v2207_v43, %v1680_v42  ;;  %vm1688_vm0 = vweird.f32 %v2207_v43  ;;  %v2209_v49 = vpop.eup %2208 }
 0xffe   : > { %vm1689_vm3 = vmor %vm1687_vm2, %vm1688_vm0  ;;  %v1712_v54 = vmul.f32 8.0, %v2209_v49  ;;  %vm1716_vm4 = vweird.f32 %v2209_v49 }
 0xfff   : > { %v1683_v45 = vmul.f32 %v2207_v43, %v1682_v44 }
0x1000   : > { %v1713_v57 = vsub.f32 1.0, %v1712_v54 }
0x1001   : > { %v1684_v47 = vmul.f32 0.5, %v1683_v45 }
0x1002   : > { %v1714_v60 = vmul.f32 %v2209_v49, %v1713_v57 }
0x1003   : > { %v1685_v48 = vsub.f32 1.5, %v1684_v47 }
0x1004   : > { %v1715_v2 = vadd.f32 %v2209_v49, %v1714_v60 }
0x1005   : > { %v1686_v50 = vmul.f32 %v2207_v43, %v1685_v48 }
0x1006   : > { %v1717_v1 = vsel %vm1716_vm4, %v2209_v49, %v1715_v2 }
0x1007   : > { %v1690_v51 = vsel %vm1689_vm3, %v2207_v43, %v1686_v50 }
0x1008   : > { %v1691_v53 = vmul.f32 %v1690_v51, %v1674_v35 }
0x100a   : > { %v1697_v55 = vmul.f32 %v2164_v5, %v1691_v53 }
0x100c   : > { %v1703_v56 = vadd.f32 %v2165_v52, %v1697_v55 }
0x100e   : > { %v1704_v58 = vsel %vm709_vm1, %v1703_v56, 0.0 }
0x100f   : > { %v1705_v59 = vrot.slane %v1704_v58, 4 }
0x1011   : > { %v1706_v61 = vadd.f32 %v1705_v59, %v1704_v58 }
0x1013   : > { %v1707_v62 = vrot.slane %v1706_v61, 2 }
0x1015   : > { %v1708_v63 = vadd.f32 %v1707_v62, %v1706_v61 }
0x1017   : > { %v1709_v0 = vrot.slane %v1708_v63, 1 }
0x1019   : > { %v1710_v3 = vadd.f32 %v1709_v0, %v1708_v63 }
0x101b   : > { %v1718_v4 = vmul.f32 %v1717_v1, %v1710_v3 }
0x101d   : > { %v1719_v6 = vpack.c.bf16 %v1718_v4, %v1718_v4 }
0x101f   : > { %2028 = vmatmul.msk.bf16.vlgmr.msra.gmra.mxu1 %vm709_vm1, %v1719_v6 }
0x109c   : > { %v1749_v8 = vpop.f32.mrf.mxu1 }
0x109d   : > { %v1750_v10 = vadd.f32 %v1749_v8, %v1724_v7 }
0x109f   : > { %1754 = vst.msk [vmem:[%s643_s27] sm:$0x1] %vm1753_vm5, %v1750_v10 }
0x10a0   : > { %2357 = shalt.err (!%p2354_p8)
}
0x10a1   : > { %2070 = dma.vmem_to_hbm [thread:$0]  (%p2557_p5), %s1767_s28, 16, %s1769_s30, %s1756_s2  }
0x10a4   : > { %v1751_v9 = vpop.f32.mrf.mxu1 }
0x10a5 PF: > { %s2959_s29 = sld [smem:[#allocation18_spill]] }
0x10a6   : > { %s2960_s5 = sld [smem:[#allocation15_spill]] }
0x10ab   : > { %p2097_p9 = scmp.ge.s32.totalorder %s2959_s29, 2 }
0x10ac   : > { %s1780_s16 = sand.u32 1, %s2960_s5  }
0x10ad   : > { %p2086_p10 = pnand %p2097_p9, %p2561_p6  ;;  %s1781_s17 = scalar_lea.sflag [#allocation4], %s1780_s16 }
0x10af   : > { %p2087_p11 = pneg %p2086_p10 }
0x10b1   : > { %2387 = dma.done.wait (%p2087_p11), %s1781_s17, 16  }
0x10b2   : > { %2389 = vsyncadd (%p2087_p11), %s1781_s17, 4294967280  ;;  %s2962_s30 = sld [smem:[#allocation19_spill]] }
0x10b3   : > { %s2963_s27 = sld [smem:[#allocation16_spill]] }
0x10b4   : > { %s2964_s28 = sld [smem:[#allocation17_spill]] }
0x10b5   : > { %s2965_s29 = sld [smem:[#allocation20_spill]] }
0x10b8   : > { %p31_p12 = scmp.ge.s32.totalorder %s2962_s30, 4  }
0x10ba   :  { %33 = sbr.rel (!%p31_p12) target bundleno = 14 (0xe), region = 159 }
0x10bf   :  { %1786 = vsyncpa [#allocation3], 1 }
0x10c0   :  { %1788 = vsyncpa [#allocation3 + $0x1], 1 }
0x10c1   :  { %1789 = vsyncpa [#allocation6], 1 }
0x10c2   :  { %1790 = vsyncpa [#allocation9], 1 }
0x10c3   :  { %1791 = vsyncpa [#allocation4], 1 }
0x10c4   :  { %1793 = vsyncpa [#allocation4 + $0x1], 1 }

</bundles_post_ra>
